<compile_context>
chip_gen: v6e
topology: v6e:2x2x1
jax: 0.10.0
libtpu: 0.0.40
codegen_flags: <defaults>
</compile_context>

<pallas_src>
import jax
import jax.numpy as jnp
from jax import lax
from jax.experimental import pallas as pl
from jax.experimental.pallas import tpu as pltpu

HID = 48            # hidden size
FC1 = 12
FC2 = 2
GPAD = 128          # padded per-gate lane width (one full vreg of lanes)
NPACK = 4 * GPAD    # 512 = packed gate axis  i|f|g|o, each 128 lanes wide
L1_OFF = 0          # layer-1 state lives in lanes [0, 48)   of each gate block
L2_OFF = 64         # layer-2 state lives in lanes [64, 112) of each gate block
GATE_SCALE = (0.5, 0.5, 1.0, 0.5)   # pre-scale i/f/o by 1/2 (tanh-identity sigmoid)


# ----------------------------------------------------------------------------
# Fused kernel: both LSTM layers (wavefront-interleaved) + relu->fc1->relu->fc2
# ----------------------------------------------------------------------------
def fused_forward_kernel(x_ref,                 # (T, D)
                         wih1p_ref,             # (D, 512)   packed x->layer1 gates
                         bias_ref,              # (1, 512)   b1 in l1 lanes, b2 in l2 lanes
                         wrec_ref,              # (128, 512) [[Whh1|Wih2],[0|Whh2]] packed
                         fw1p_ref, fb1_ref,     # (128, 12) zero-padded rows, (1, 12)
                         fw2_ref, fb2_ref,      # (12, 2), (1, 2)
                         out_ref,               # (T, 2)
                         pre_scr,               # VMEM (T, 512): hoisted layer-1 projection + biases
                         seq_scr):              # VMEM (T, 128): combined h (layer-2 part feeds head)
    T = x_ref.shape[0]

    # Hoisted layer-1 input projection for all timesteps; layer-2 lanes carry b2.
    pre_scr[...] = (jnp.dot(x_ref[...], wih1p_ref[...],
                            preferred_element_type=jnp.float32) + bias_ref[...])

    def gate_math(z, c_prev):
        # One tanh over the whole packed vector.  i/f/o columns were pre-scaled by
        # 0.5 offline, so sigmoid(z) = 0.5*tanh(z/2) + 0.5; g stays plain tanh.
        t = jnp.tanh(z)
        i = 0.5 * t[:, 0 * GPAD:1 * GPAD] + 0.5
        f = 0.5 * t[:, 1 * GPAD:2 * GPAD] + 0.5
        g = t[:, 2 * GPAD:3 * GPAD]
        o = 0.5 * t[:, 3 * GPAD:4 * GPAD] + 0.5
        c_new = f * c_prev + i * g
        h_new = o * jnp.tanh(c_new)
        return h_new, c_new            # pad lanes stay exactly 0 (z=0 -> g=0)

    # ---- peeled combined step 0: h_prev = c_prev = 0, so no matmul is needed.
    #      Layer 2 must not start yet: mask its lanes out of the g gate so c,h stay 0.
    lane = lax.broadcasted_iota(jnp.int32, (1, GPAD), 1)
    l1mask = (lane < HID).astype(jnp.float32)
    t0 = jnp.tanh(pre_scr[0:1, :])
    i0 = 0.5 * t0[:, 0 * GPAD:1 * GPAD] + 0.5
    g0 = t0[:, 2 * GPAD:3 * GPAD] * l1mask
    o0 = 0.5 * t0[:, 3 * GPAD:4 * GPAD] + 0.5
    c = i0 * g0                       # f * c_prev == 0
    h = o0 * jnp.tanh(c)              # lanes >= 48 are exactly 0

    # ---- combined steps 1 .. T-1: layer-1 step s and layer-2 step s-1 share ONE
    #      (1,128)@(128,512) matmul and ONE packed tanh.
    for s in range(1, T):
        z = (jnp.dot(h, wrec_ref[...], preferred_element_type=jnp.float32)
             + pre_scr[s:s + 1, :])
        h, c = gate_math(z, c)
        seq_scr[s - 1:s, :] = h       # lanes [64,112) hold h2_{s-1}; unmasked vreg store

    # ---- combined step T: only layer 2 is live (layer-1 lanes compute harmless junk).
    z = (jnp.dot(h, wrec_ref[...], preferred_element_type=jnp.float32)
         + bias_ref[...])
    h, c = gate_math(z, c)
    seq_scr[T - 1:T, :] = h

    # ---- head epilogue: relu -> fc1 -> relu -> fc2.
    # fw1p has zero rows outside [64,112), so layer-1 / pad lanes drop out of fc1.
    y = jnp.maximum(seq_scr[...], 0.0)                                      # (T, 128)
    y = jnp.dot(y, fw1p_ref[...], preferred_element_type=jnp.float32) + fb1_ref[...]
    y = jnp.maximum(y, 0.0)                                                 # (T, 12)
    y = jnp.dot(y, fw2_ref[...], preferred_element_type=jnp.float32) + fb2_ref[...]
    out_ref[...] = y                                                        # (T, 2)


# ----------------------------------------------------------------------------
# Wrapper
# ----------------------------------------------------------------------------
def l05_day2_c_forward(x, packed):
    T = x.shape[0]
    out2d = pl.pallas_call(
        fused_forward_kernel,
        out_shape=jax.ShapeDtypeStruct((T, FC2), jnp.float32),
        in_specs=[pl.BlockSpec(memory_space=pltpu.MemorySpace.VMEM)] * 8,
        out_specs=pl.BlockSpec(memory_space=pltpu.MemorySpace.VMEM),
        scratch_shapes=[pltpu.VMEM((T, NPACK), jnp.float32),   # hoisted projections
                        pltpu.VMEM((T, GPAD), jnp.float32)],   # layer-2 hidden sequence
    )(x.astype(jnp.float32), packed["wih1p"], packed["bias"], packed["wrec"],
      packed["fw1p"], packed["fb1"], packed["fw2"], packed["fb2"])
    # torch.squeeze(dim=0) only squeezes when seq == 1; otherwise keep batch dim of 1.
    if T == 1:
        return out2d                       # (1, 2)
    return out2d.reshape(T, 1, FC2)        # (seq, 1, 2)


# ----------------------------------------------------------------------------
# Raw (PyTorch-layout) parameter init + offline packing into the fused layout
# ----------------------------------------------------------------------------
def init_raw_params(key, input_size):
    klstm = 1.0 / (HID ** 0.5)
    kfc1 = 1.0 / (HID ** 0.5)
    kfc2 = 1.0 / (FC1 ** 0.5)
    keys = jax.random.split(key, 12)

    def u(kk, shape, b):
        return jax.random.uniform(kk, shape, minval=-b, maxval=b, dtype=jnp.float32)

    return {
        "w_ih_l0": u(keys[0], (4 * HID, input_size), klstm),
        "w_hh_l0": u(keys[1], (4 * HID, HID), klstm),
        "b_ih_l0": u(keys[2], (4 * HID,), klstm),
        "b_hh_l0": u(keys[3], (4 * HID,), klstm),
        "w_ih_l1": u(keys[4], (4 * HID, HID), klstm),
        "w_hh_l1": u(keys[5], (4 * HID, HID), klstm),
        "b_ih_l1": u(keys[6], (4 * HID,), klstm),
        "b_hh_l1": u(keys[7], (4 * HID,), klstm),
        "fc1_w": u(keys[8], (FC1, HID), kfc1),
        "fc1_b": u(keys[9], (FC1,), kfc1),
        "fc2_w": u(keys[10], (FC2, FC1), kfc2),
        "fc2_b": u(keys[11], (FC2,), kfc2),
    }


def _pack_cols(w_t, lane_off):
    """w_t: (in_dim, 4*HID), PyTorch gate order i|f|g|o along last dim.
    Returns (in_dim, NPACK) with gate g in lanes [g*GPAD+lane_off, +HID), 0.5-scaled i/f/o."""
    out = jnp.zeros((w_t.shape[0], NPACK), jnp.float32)
    for gi in range(4):
        blk = w_t[:, gi * HID:(gi + 1) * HID] * GATE_SCALE[gi]
        out = out.at[:, gi * GPAD + lane_off: gi * GPAD + lane_off + HID].set(blk)
    return out


def _pack_bias(b, lane_off):
    out = jnp.zeros((NPACK,), jnp.float32)
    for gi in range(4):
        out = out.at[gi * GPAD + lane_off: gi * GPAD + lane_off + HID].set(
            b[gi * HID:(gi + 1) * HID] * GATE_SCALE[gi])
    return out


def pack_params(raw):
    wih1p = _pack_cols(raw["w_ih_l0"].T, L1_OFF)                               # (D, 512)
    bias = (_pack_bias(raw["b_ih_l0"] + raw["b_hh_l0"], L1_OFF)
            + _pack_bias(raw["b_ih_l1"] + raw["b_hh_l1"], L2_OFF))[None, :]    # (1, 512)
    # Block-structured recurrent weight: rows 0:48 = h1 lanes -> [Whh1 | Wih2],
    # rows 64:112 = h2 lanes -> [0 | Whh2]; all other rows/lanes are zero.
    wrec = jnp.zeros((GPAD, NPACK), jnp.float32)
    wrec = wrec.at[0:HID, :].set(_pack_cols(raw["w_hh_l0"].T, L1_OFF)
                                 + _pack_cols(raw["w_ih_l1"].T, L2_OFF))
    wrec = wrec.at[L2_OFF:L2_OFF + HID, :].set(_pack_cols(raw["w_hh_l1"].T, L2_OFF))
    fw1p = jnp.zeros((GPAD, FC1), jnp.float32).at[L2_OFF:L2_OFF + HID, :].set(raw["fc1_w"].T)
    return {
        "wih1p": wih1p, "bias": bias, "wrec": wrec,
        "fw1p": fw1p, "fb1": raw["fc1_b"][None, :],
        "fw2": raw["fc2_w"].T, "fb2": raw["fc2_b"][None, :],
    }


# ----------------------------------------------------------------------------
# Pure-JAX reference (PyTorch LSTM semantics) for a tolerance check
# ----------------------------------------------------------------------------
def reference_forward(x, raw):
    hi = jax.lax.Precision.HIGHEST

    def lstm_layer(inp, w_ih, w_hh, b_ih, b_hh):
        def step(carry, x_t):
            h, c = carry
            z = (jnp.dot(x_t, w_ih.T, precision=hi)
                 + jnp.dot(h, w_hh.T, precision=hi) + b_ih + b_hh)
            i = jax.nn.sigmoid(z[0:HID])
            f = jax.nn.sigmoid(z[HID:2 * HID])
            g = jnp.tanh(z[2 * HID:3 * HID])
            o = jax.nn.sigmoid(z[3 * HID:4 * HID])
            c = f * c + i * g
            h = o * jnp.tanh(c)
            return (h, c), h
        h0 = jnp.zeros((HID,), jnp.float32)
        _, hs = lax.scan(step, (h0, h0), inp)
        return hs

    h1 = lstm_layer(x, raw["w_ih_l0"], raw["w_hh_l0"], raw["b_ih_l0"], raw["b_hh_l0"])
    h2 = lstm_layer(h1, raw["w_ih_l1"], raw["w_hh_l1"], raw["b_ih_l1"], raw["b_hh_l1"])
    y = jnp.dot(jnp.maximum(h2, 0.0), raw["fc1_w"].T, precision=hi) + raw["fc1_b"]
    y = jnp.dot(jnp.maximum(y, 0.0), raw["fc2_w"].T, precision=hi) + raw["fc2_b"]
    return y   # (T, 2)


if __name__ == "__main__":
    input_size = 16
    seq = 8

    key = jax.random.PRNGKey(0)
    kx, kp = jax.random.split(key)
    x = jax.random.normal(kx, (seq, input_size), dtype=jnp.float32)
    raw = init_raw_params(kp, input_size)
    packed = pack_params(raw)

    out = l05_day2_c_forward(x, packed)
    out = jax.block_until_ready(out)
    assert out.shape == (seq, 1, FC2) and out.dtype == jnp.float32

    ref = reference_forward(x, raw)
    max_diff = float(jnp.max(jnp.abs(out.reshape(seq, FC2) - ref)))
    assert max_diff < 2e-2, f"kernel vs reference max diff {max_diff}"

    print("KERNEL_OK")
</pallas_src>

<mosaic_0001>
module attributes {stable_mosaic.version = 11 : i64} {
  func.func @fused_forward_kernel(%arg0: memref<8x16xf32, #tpu.memory_space<vmem>>, %arg1: memref<16x512xf32, #tpu.memory_space<vmem>>, %arg2: memref<1x512xf32, #tpu.memory_space<vmem>>, %arg3: memref<128x512xf32, #tpu.memory_space<vmem>>, %arg4: memref<128x12xf32, #tpu.memory_space<vmem>>, %arg5: memref<1x12xf32, #tpu.memory_space<vmem>>, %arg6: memref<12x2xf32, #tpu.memory_space<vmem>>, %arg7: memref<1x2xf32, #tpu.memory_space<vmem>>, %arg8: memref<8x2xf32, #tpu.memory_space<vmem>>, %arg9: memref<8x512xf32, #tpu.memory_space<vmem>>, %arg10: memref<8x128xf32, #tpu.memory_space<vmem>>) attributes {dimension_semantics = [], scalar_prefetch = 0 : i64, scratch_operands = 2 : i64, tpu.core_type = #tpu.core_type<tc>} {
    %c0 = arith.constant 0 : index
    %c0_0 = arith.constant 0 : index
    %0 = vector.load %arg0[%c0, %c0_0] : memref<8x16xf32, #tpu.memory_space<vmem>>, vector<8x16xf32>
    %c0_1 = arith.constant 0 : index
    %c0_2 = arith.constant 0 : index
    %1 = vector.load %arg1[%c0_1, %c0_2] : memref<16x512xf32, #tpu.memory_space<vmem>>, vector<16x512xf32>
    %cst = arith.constant dense<0.000000e+00> : vector<8x512xf32>
    %2 = tpu.matmul %0, %1, %cst {dimension_numbers = #tpu.dot_dimension_numbers<[1], [0], [0], [1], [0, 0, 1, 1], [], []>} : vector<8x16xf32>, vector<16x512xf32>, vector<8x512xf32> -> vector<8x512xf32>
    %c0_3 = arith.constant 0 : index
    %c0_4 = arith.constant 0 : index
    %3 = vector.load %arg2[%c0_3, %c0_4] : memref<1x512xf32, #tpu.memory_space<vmem>>, vector<1x512xf32>
    %4 = vector.broadcast %3 : vector<1x512xf32> to vector<8x512xf32>
    %5 = arith.addf %2, %4 : vector<8x512xf32>
    %c0_5 = arith.constant 0 : index
    %c0_6 = arith.constant 0 : index
    %6 = vector.load %arg9[%c0_5, %c0_6] : memref<8x512xf32, #tpu.memory_space<vmem>>, vector<8x512xf32>
    tpu.vector_store %arg9[%c0_5, %c0_6], %5 {strides = array<i32>} : memref<8x512xf32, #tpu.memory_space<vmem>>, vector<8x512xf32>,
    %7 = tpu.iota {dimensions = array<i32: 1>} : vector<1x128xi32>
    %c48_i32 = arith.constant 48 : i32
    %8 = vector.broadcast %c48_i32 : i32 to vector<1x128xi32>
    %9 = arith.cmpi slt, %7, %8 : vector<1x128xi32>
    %10 = arith.extui %9 : vector<1x128xi1> to vector<1x128xi32>
    %11 = arith.sitofp %10 : vector<1x128xi32> to vector<1x128xf32>
    %c0_7 = arith.constant 0 : index
    %c0_8 = arith.constant 0 : index
    %12 = vector.load %arg9[%c0_7, %c0_8] : memref<8x512xf32, #tpu.memory_space<vmem>>, vector<1x512xf32>
    %13 = math.tanh %12 : vector<1x512xf32>
    %14 = vector.extract_strided_slice %13 {offsets = [0, 0], sizes = [1, 128], strides = [1, 1]} : vector<1x512xf32> to vector<1x128xf32>
    %cst_9 = arith.constant 5.000000e-01 : f32
    %15 = vector.broadcast %cst_9 : f32 to vector<1x128xf32>
    %16 = arith.mulf %15, %14 : vector<1x128xf32>
    %cst_10 = arith.constant 5.000000e-01 : f32
    %17 = vector.broadcast %cst_10 : f32 to vector<1x128xf32>
    %18 = arith.addf %16, %17 : vector<1x128xf32>
    %19 = vector.extract_strided_slice %13 {offsets = [0, 256], sizes = [1, 128], strides = [1, 1]} : vector<1x512xf32> to vector<1x128xf32>
    %20 = arith.mulf %19, %11 : vector<1x128xf32>
    %21 = vector.extract_strided_slice %13 {offsets = [0, 384], sizes = [1, 128], strides = [1, 1]} : vector<1x512xf32> to vector<1x128xf32>
    %cst_11 = arith.constant 5.000000e-01 : f32
    %22 = vector.broadcast %cst_11 : f32 to vector<1x128xf32>
    %23 = arith.mulf %22, %21 : vector<1x128xf32>
    %cst_12 = arith.constant 5.000000e-01 : f32
    %24 = vector.broadcast %cst_12 : f32 to vector<1x128xf32>
    %25 = arith.addf %23, %24 : vector<1x128xf32>
    %26 = arith.mulf %18, %20 : vector<1x128xf32>
    %27 = math.tanh %26 : vector<1x128xf32>
    %28 = arith.mulf %25, %27 : vector<1x128xf32>
    %c0_13 = arith.constant 0 : index
    %c0_14 = arith.constant 0 : index
    %29 = vector.load %arg3[%c0_13, %c0_14] : memref<128x512xf32, #tpu.memory_space<vmem>>, vector<128x512xf32>
    %cst_15 = arith.constant dense<0.000000e+00> : vector<1x512xf32>
    %30 = tpu.matmul %28, %29, %cst_15 {dimension_numbers = #tpu.dot_dimension_numbers<[1], [0], [0], [1], [0, 0, 1, 1], [], []>} : vector<1x128xf32>, vector<128x512xf32>, vector<1x512xf32> -> vector<1x512xf32>
    %c1 = arith.constant 1 : index
    %c0_16 = arith.constant 0 : index
    %31 = vector.load %arg9[%c1, %c0_16] : memref<8x512xf32, #tpu.memory_space<vmem>>, vector<1x512xf32>
    %32 = arith.addf %30, %31 : vector<1x512xf32>
    %33 = math.tanh %32 : vector<1x512xf32>
    %34 = vector.extract_strided_slice %33 {offsets = [0, 0], sizes = [1, 128], strides = [1, 1]} : vector<1x512xf32> to vector<1x128xf32>
    %cst_17 = arith.constant 5.000000e-01 : f32
    %35 = vector.broadcast %cst_17 : f32 to vector<1x128xf32>
    %36 = arith.mulf %35, %34 : vector<1x128xf32>
    %cst_18 = arith.constant 5.000000e-01 : f32
    %37 = vector.broadcast %cst_18 : f32 to vector<1x128xf32>
    %38 = arith.addf %36, %37 : vector<1x128xf32>
    %39 = vector.extract_strided_slice %33 {offsets = [0, 128], sizes = [1, 128], strides = [1, 1]} : vector<1x512xf32> to vector<1x128xf32>
    %cst_19 = arith.constant 5.000000e-01 : f32
    %40 = vector.broadcast %cst_19 : f32 to vector<1x128xf32>
    %41 = arith.mulf %40, %39 : vector<1x128xf32>
    %cst_20 = arith.constant 5.000000e-01 : f32
    %42 = vector.broadcast %cst_20 : f32 to vector<1x128xf32>
    %43 = arith.addf %41, %42 : vector<1x128xf32>
    %44 = vector.extract_strided_slice %33 {offsets = [0, 256], sizes = [1, 128], strides = [1, 1]} : vector<1x512xf32> to vector<1x128xf32>
    %45 = vector.extract_strided_slice %33 {offsets = [0, 384], sizes = [1, 128], strides = [1, 1]} : vector<1x512xf32> to vector<1x128xf32>
    %cst_21 = arith.constant 5.000000e-01 : f32
    %46 = vector.broadcast %cst_21 : f32 to vector<1x128xf32>
    %47 = arith.mulf %46, %45 : vector<1x128xf32>
    %cst_22 = arith.constant 5.000000e-01 : f32
    %48 = vector.broadcast %cst_22 : f32 to vector<1x128xf32>
    %49 = arith.addf %47, %48 : vector<1x128xf32>
    %50 = arith.mulf %43, %26 : vector<1x128xf32>
    %51 = arith.mulf %38, %44 : vector<1x128xf32>
    %52 = arith.addf %50, %51 : vector<1x128xf32>
    %53 = math.tanh %52 : vector<1x128xf32>
    %54 = arith.mulf %49, %53 : vector<1x128xf32>
    %c0_23 = arith.constant 0 : index
    %c0_24 = arith.constant 0 : index
    %55 = vector.load %arg10[%c0_23, %c0_24] : memref<8x128xf32, #tpu.memory_space<vmem>>, vector<1x128xf32>
    tpu.vector_store %arg10[%c0_23, %c0_24], %54 {strides = array<i32>} : memref<8x128xf32, #tpu.memory_space<vmem>>, vector<1x128xf32>,
    %c0_25 = arith.constant 0 : index
    %c0_26 = arith.constant 0 : index
    %56 = vector.load %arg3[%c0_25, %c0_26] : memref<128x512xf32, #tpu.memory_space<vmem>>, vector<128x512xf32>
    %cst_27 = arith.constant dense<0.000000e+00> : vector<1x512xf32>
    %57 = tpu.matmul %54, %56, %cst_27 {dimension_numbers = #tpu.dot_dimension_numbers<[1], [0], [0], [1], [0, 0, 1, 1], [], []>} : vector<1x128xf32>, vector<128x512xf32>, vector<1x512xf32> -> vector<1x512xf32>
    %c2 = arith.constant 2 : index
    %c0_28 = arith.constant 0 : index
    %58 = vector.load %arg9[%c2, %c0_28] : memref<8x512xf32, #tpu.memory_space<vmem>>, vector<1x512xf32>
    %59 = arith.addf %57, %58 : vector<1x512xf32>
    %60 = math.tanh %59 : vector<1x512xf32>
    %61 = vector.extract_strided_slice %60 {offsets = [0, 0], sizes = [1, 128], strides = [1, 1]} : vector<1x512xf32> to vector<1x128xf32>
    %cst_29 = arith.constant 5.000000e-01 : f32
    %62 = vector.broadcast %cst_29 : f32 to vector<1x128xf32>
    %63 = arith.mulf %62, %61 : vector<1x128xf32>
    %cst_30 = arith.constant 5.000000e-01 : f32
    %64 = vector.broadcast %cst_30 : f32 to vector<1x128xf32>
    %65 = arith.addf %63, %64 : vector<1x128xf32>
    %66 = vector.extract_strided_slice %60 {offsets = [0, 128], sizes = [1, 128], strides = [1, 1]} : vector<1x512xf32> to vector<1x128xf32>
    %cst_31 = arith.constant 5.000000e-01 : f32
    %67 = vector.broadcast %cst_31 : f32 to vector<1x128xf32>
    %68 = arith.mulf %67, %66 : vector<1x128xf32>
    %cst_32 = arith.constant 5.000000e-01 : f32
    %69 = vector.broadcast %cst_32 : f32 to vector<1x128xf32>
    %70 = arith.addf %68, %69 : vector<1x128xf32>
    %71 = vector.extract_strided_slice %60 {offsets = [0, 256], sizes = [1, 128], strides = [1, 1]} : vector<1x512xf32> to vector<1x128xf32>
    %72 = vector.extract_strided_slice %60 {offsets = [0, 384], sizes = [1, 128], strides = [1, 1]} : vector<1x512xf32> to vector<1x128xf32>
    %cst_33 = arith.constant 5.000000e-01 : f32
    %73 = vector.broadcast %cst_33 : f32 to vector<1x128xf32>
    %74 = arith.mulf %73, %72 : vector<1x128xf32>
    %cst_34 = arith.constant 5.000000e-01 : f32
    %75 = vector.broadcast %cst_34 : f32 to vector<1x128xf32>
    %76 = arith.addf %74, %75 : vector<1x128xf32>
    %77 = arith.mulf %70, %52 : vector<1x128xf32>
    %78 = arith.mulf %65, %71 : vector<1x128xf32>
    %79 = arith.addf %77, %78 : vector<1x128xf32>
    %80 = math.tanh %79 : vector<1x128xf32>
    %81 = arith.mulf %76, %80 : vector<1x128xf32>
    %c1_35 = arith.constant 1 : index
    %c0_36 = arith.constant 0 : index
    %82 = vector.load %arg10[%c1_35, %c0_36] : memref<8x128xf32, #tpu.memory_space<vmem>>, vector<1x128xf32>
    tpu.vector_store %arg10[%c1_35, %c0_36], %81 {strides = array<i32>} : memref<8x128xf32, #tpu.memory_space<vmem>>, vector<1x128xf32>,
    %c0_37 = arith.constant 0 : index
    %c0_38 = arith.constant 0 : index
    %83 = vector.load %arg3[%c0_37, %c0_38] : memref<128x512xf32, #tpu.memory_space<vmem>>, vector<128x512xf32>
    %cst_39 = arith.constant dense<0.000000e+00> : vector<1x512xf32>
    %84 = tpu.matmul %81, %83, %cst_39 {dimension_numbers = #tpu.dot_dimension_numbers<[1], [0], [0], [1], [0, 0, 1, 1], [], []>} : vector<1x128xf32>, vector<128x512xf32>, vector<1x512xf32> -> vector<1x512xf32>
    %c3 = arith.constant 3 : index
    %c0_40 = arith.constant 0 : index
    %85 = vector.load %arg9[%c3, %c0_40] : memref<8x512xf32, #tpu.memory_space<vmem>>, vector<1x512xf32>
    %86 = arith.addf %84, %85 : vector<1x512xf32>
    %87 = math.tanh %86 : vector<1x512xf32>
    %88 = vector.extract_strided_slice %87 {offsets = [0, 0], sizes = [1, 128], strides = [1, 1]} : vector<1x512xf32> to vector<1x128xf32>
    %cst_41 = arith.constant 5.000000e-01 : f32
    %89 = vector.broadcast %cst_41 : f32 to vector<1x128xf32>
    %90 = arith.mulf %89, %88 : vector<1x128xf32>
    %cst_42 = arith.constant 5.000000e-01 : f32
    %91 = vector.broadcast %cst_42 : f32 to vector<1x128xf32>
    %92 = arith.addf %90, %91 : vector<1x128xf32>
    %93 = vector.extract_strided_slice %87 {offsets = [0, 128], sizes = [1, 128], strides = [1, 1]} : vector<1x512xf32> to vector<1x128xf32>
    %cst_43 = arith.constant 5.000000e-01 : f32
    %94 = vector.broadcast %cst_43 : f32 to vector<1x128xf32>
    %95 = arith.mulf %94, %93 : vector<1x128xf32>
    %cst_44 = arith.constant 5.000000e-01 : f32
    %96 = vector.broadcast %cst_44 : f32 to vector<1x128xf32>
    %97 = arith.addf %95, %96 : vector<1x128xf32>
    %98 = vector.extract_strided_slice %87 {offsets = [0, 256], sizes = [1, 128], strides = [1, 1]} : vector<1x512xf32> to vector<1x128xf32>
    %99 = vector.extract_strided_slice %87 {offsets = [0, 384], sizes = [1, 128], strides = [1, 1]} : vector<1x512xf32> to vector<1x128xf32>
    %cst_45 = arith.constant 5.000000e-01 : f32
    %100 = vector.broadcast %cst_45 : f32 to vector<1x128xf32>
    %101 = arith.mulf %100, %99 : vector<1x128xf32>
    %cst_46 = arith.constant 5.000000e-01 : f32
    %102 = vector.broadcast %cst_46 : f32 to vector<1x128xf32>
    %103 = arith.addf %101, %102 : vector<1x128xf32>
    %104 = arith.mulf %97, %79 : vector<1x128xf32>
    %105 = arith.mulf %92, %98 : vector<1x128xf32>
    %106 = arith.addf %104, %105 : vector<1x128xf32>
    %107 = math.tanh %106 : vector<1x128xf32>
    %108 = arith.mulf %103, %107 : vector<1x128xf32>
    %c2_47 = arith.constant 2 : index
    %c0_48 = arith.constant 0 : index
    %109 = vector.load %arg10[%c2_47, %c0_48] : memref<8x128xf32, #tpu.memory_space<vmem>>, vector<1x128xf32>
    tpu.vector_store %arg10[%c2_47, %c0_48], %108 {strides = array<i32>} : memref<8x128xf32, #tpu.memory_space<vmem>>, vector<1x128xf32>,
    %c0_49 = arith.constant 0 : index
    %c0_50 = arith.constant 0 : index
    %110 = vector.load %arg3[%c0_49, %c0_50] : memref<128x512xf32, #tpu.memory_space<vmem>>, vector<128x512xf32>
    %cst_51 = arith.constant dense<0.000000e+00> : vector<1x512xf32>
    %111 = tpu.matmul %108, %110, %cst_51 {dimension_numbers = #tpu.dot_dimension_numbers<[1], [0], [0], [1], [0, 0, 1, 1], [], []>} : vector<1x128xf32>, vector<128x512xf32>, vector<1x512xf32> -> vector<1x512xf32>
    %c4 = arith.constant 4 : index
    %c0_52 = arith.constant 0 : index
    %112 = vector.load %arg9[%c4, %c0_52] : memref<8x512xf32, #tpu.memory_space<vmem>>, vector<1x512xf32>
    %113 = arith.addf %111, %112 : vector<1x512xf32>
    %114 = math.tanh %113 : vector<1x512xf32>
    %115 = vector.extract_strided_slice %114 {offsets = [0, 0], sizes = [1, 128], strides = [1, 1]} : vector<1x512xf32> to vector<1x128xf32>
    %cst_53 = arith.constant 5.000000e-01 : f32
    %116 = vector.broadcast %cst_53 : f32 to vector<1x128xf32>
    %117 = arith.mulf %116, %115 : vector<1x128xf32>
    %cst_54 = arith.constant 5.000000e-01 : f32
    %118 = vector.broadcast %cst_54 : f32 to vector<1x128xf32>
    %119 = arith.addf %117, %118 : vector<1x128xf32>
    %120 = vector.extract_strided_slice %114 {offsets = [0, 128], sizes = [1, 128], strides = [1, 1]} : vector<1x512xf32> to vector<1x128xf32>
    %cst_55 = arith.constant 5.000000e-01 : f32
    %121 = vector.broadcast %cst_55 : f32 to vector<1x128xf32>
    %122 = arith.mulf %121, %120 : vector<1x128xf32>
    %cst_56 = arith.constant 5.000000e-01 : f32
    %123 = vector.broadcast %cst_56 : f32 to vector<1x128xf32>
    %124 = arith.addf %122, %123 : vector<1x128xf32>
    %125 = vector.extract_strided_slice %114 {offsets = [0, 256], sizes = [1, 128], strides = [1, 1]} : vector<1x512xf32> to vector<1x128xf32>
    %126 = vector.extract_strided_slice %114 {offsets = [0, 384], sizes = [1, 128], strides = [1, 1]} : vector<1x512xf32> to vector<1x128xf32>
    %cst_57 = arith.constant 5.000000e-01 : f32
    %127 = vector.broadcast %cst_57 : f32 to vector<1x128xf32>
    %128 = arith.mulf %127, %126 : vector<1x128xf32>
    %cst_58 = arith.constant 5.000000e-01 : f32
    %129 = vector.broadcast %cst_58 : f32 to vector<1x128xf32>
    %130 = arith.addf %128, %129 : vector<1x128xf32>
    %131 = arith.mulf %124, %106 : vector<1x128xf32>
    %132 = arith.mulf %119, %125 : vector<1x128xf32>
    %133 = arith.addf %131, %132 : vector<1x128xf32>
    %134 = math.tanh %133 : vector<1x128xf32>
    %135 = arith.mulf %130, %134 : vector<1x128xf32>
    %c3_59 = arith.constant 3 : index
    %c0_60 = arith.constant 0 : index
    %136 = vector.load %arg10[%c3_59, %c0_60] : memref<8x128xf32, #tpu.memory_space<vmem>>, vector<1x128xf32>
    tpu.vector_store %arg10[%c3_59, %c0_60], %135 {strides = array<i32>} : memref<8x128xf32, #tpu.memory_space<vmem>>, vector<1x128xf32>,
    %c0_61 = arith.constant 0 : index
    %c0_62 = arith.constant 0 : index
    %137 = vector.load %arg3[%c0_61, %c0_62] : memref<128x512xf32, #tpu.memory_space<vmem>>, vector<128x512xf32>
    %cst_63 = arith.constant dense<0.000000e+00> : vector<1x512xf32>
    %138 = tpu.matmul %135, %137, %cst_63 {dimension_numbers = #tpu.dot_dimension_numbers<[1], [0], [0], [1], [0, 0, 1, 1], [], []>} : vector<1x128xf32>, vector<128x512xf32>, vector<1x512xf32> -> vector<1x512xf32>
    %c5 = arith.constant 5 : index
    %c0_64 = arith.constant 0 : index
    %139 = vector.load %arg9[%c5, %c0_64] : memref<8x512xf32, #tpu.memory_space<vmem>>, vector<1x512xf32>
    %140 = arith.addf %138, %139 : vector<1x512xf32>
    %141 = math.tanh %140 : vector<1x512xf32>
    %142 = vector.extract_strided_slice %141 {offsets = [0, 0], sizes = [1, 128], strides = [1, 1]} : vector<1x512xf32> to vector<1x128xf32>
    %cst_65 = arith.constant 5.000000e-01 : f32
    %143 = vector.broadcast %cst_65 : f32 to vector<1x128xf32>
    %144 = arith.mulf %143, %142 : vector<1x128xf32>
    %cst_66 = arith.constant 5.000000e-01 : f32
    %145 = vector.broadcast %cst_66 : f32 to vector<1x128xf32>
    %146 = arith.addf %144, %145 : vector<1x128xf32>
    %147 = vector.extract_strided_slice %141 {offsets = [0, 128], sizes = [1, 128], strides = [1, 1]} : vector<1x512xf32> to vector<1x128xf32>
    %cst_67 = arith.constant 5.000000e-01 : f32
    %148 = vector.broadcast %cst_67 : f32 to vector<1x128xf32>
    %149 = arith.mulf %148, %147 : vector<1x128xf32>
    %cst_68 = arith.constant 5.000000e-01 : f32
    %150 = vector.broadcast %cst_68 : f32 to vector<1x128xf32>
    %151 = arith.addf %149, %150 : vector<1x128xf32>
    %152 = vector.extract_strided_slice %141 {offsets = [0, 256], sizes = [1, 128], strides = [1, 1]} : vector<1x512xf32> to vector<1x128xf32>
    %153 = vector.extract_strided_slice %141 {offsets = [0, 384], sizes = [1, 128], strides = [1, 1]} : vector<1x512xf32> to vector<1x128xf32>
    %cst_69 = arith.constant 5.000000e-01 : f32
    %154 = vector.broadcast %cst_69 : f32 to vector<1x128xf32>
    %155 = arith.mulf %154, %153 : vector<1x128xf32>
    %cst_70 = arith.constant 5.000000e-01 : f32
    %156 = vector.broadcast %cst_70 : f32 to vector<1x128xf32>
    %157 = arith.addf %155, %156 : vector<1x128xf32>
    %158 = arith.mulf %151, %133 : vector<1x128xf32>
    %159 = arith.mulf %146, %152 : vector<1x128xf32>
    %160 = arith.addf %158, %159 : vector<1x128xf32>
    %161 = math.tanh %160 : vector<1x128xf32>
    %162 = arith.mulf %157, %161 : vector<1x128xf32>
    %c4_71 = arith.constant 4 : index
    %c0_72 = arith.constant 0 : index
    %163 = vector.load %arg10[%c4_71, %c0_72] : memref<8x128xf32, #tpu.memory_space<vmem>>, vector<1x128xf32>
    tpu.vector_store %arg10[%c4_71, %c0_72], %162 {strides = array<i32>} : memref<8x128xf32, #tpu.memory_space<vmem>>, vector<1x128xf32>,
    %c0_73 = arith.constant 0 : index
    %c0_74 = arith.constant 0 : index
    %164 = vector.load %arg3[%c0_73, %c0_74] : memref<128x512xf32, #tpu.memory_space<vmem>>, vector<128x512xf32>
    %cst_75 = arith.constant dense<0.000000e+00> : vector<1x512xf32>
    %165 = tpu.matmul %162, %164, %cst_75 {dimension_numbers = #tpu.dot_dimension_numbers<[1], [0], [0], [1], [0, 0, 1, 1], [], []>} : vector<1x128xf32>, vector<128x512xf32>, vector<1x512xf32> -> vector<1x512xf32>
    %c6 = arith.constant 6 : index
    %c0_76 = arith.constant 0 : index
    %166 = vector.load %arg9[%c6, %c0_76] : memref<8x512xf32, #tpu.memory_space<vmem>>, vector<1x512xf32>
    %167 = arith.addf %165, %166 : vector<1x512xf32>
    %168 = math.tanh %167 : vector<1x512xf32>
    %169 = vector.extract_strided_slice %168 {offsets = [0, 0], sizes = [1, 128], strides = [1, 1]} : vector<1x512xf32> to vector<1x128xf32>
    %cst_77 = arith.constant 5.000000e-01 : f32
    %170 = vector.broadcast %cst_77 : f32 to vector<1x128xf32>
    %171 = arith.mulf %170, %169 : vector<1x128xf32>
    %cst_78 = arith.constant 5.000000e-01 : f32
    %172 = vector.broadcast %cst_78 : f32 to vector<1x128xf32>
    %173 = arith.addf %171, %172 : vector<1x128xf32>
    %174 = vector.extract_strided_slice %168 {offsets = [0, 128], sizes = [1, 128], strides = [1, 1]} : vector<1x512xf32> to vector<1x128xf32>
    %cst_79 = arith.constant 5.000000e-01 : f32
    %175 = vector.broadcast %cst_79 : f32 to vector<1x128xf32>
    %176 = arith.mulf %175, %174 : vector<1x128xf32>
    %cst_80 = arith.constant 5.000000e-01 : f32
    %177 = vector.broadcast %cst_80 : f32 to vector<1x128xf32>
    %178 = arith.addf %176, %177 : vector<1x128xf32>
    %179 = vector.extract_strided_slice %168 {offsets = [0, 256], sizes = [1, 128], strides = [1, 1]} : vector<1x512xf32> to vector<1x128xf32>
    %180 = vector.extract_strided_slice %168 {offsets = [0, 384], sizes = [1, 128], strides = [1, 1]} : vector<1x512xf32> to vector<1x128xf32>
    %cst_81 = arith.constant 5.000000e-01 : f32
    %181 = vector.broadcast %cst_81 : f32 to vector<1x128xf32>
    %182 = arith.mulf %181, %180 : vector<1x128xf32>
    %cst_82 = arith.constant 5.000000e-01 : f32
    %183 = vector.broadcast %cst_82 : f32 to vector<1x128xf32>
    %184 = arith.addf %182, %183 : vector<1x128xf32>
    %185 = arith.mulf %178, %160 : vector<1x128xf32>
    %186 = arith.mulf %173, %179 : vector<1x128xf32>
    %187 = arith.addf %185, %186 : vector<1x128xf32>
    %188 = math.tanh %187 : vector<1x128xf32>
    %189 = arith.mulf %184, %188 : vector<1x128xf32>
    %c5_83 = arith.constant 5 : index
    %c0_84 = arith.constant 0 : index
    %190 = vector.load %arg10[%c5_83, %c0_84] : memref<8x128xf32, #tpu.memory_space<vmem>>, vector<1x128xf32>
    tpu.vector_store %arg10[%c5_83, %c0_84], %189 {strides = array<i32>} : memref<8x128xf32, #tpu.memory_space<vmem>>, vector<1x128xf32>,
    %c0_85 = arith.constant 0 : index
    %c0_86 = arith.constant 0 : index
    %191 = vector.load %arg3[%c0_85, %c0_86] : memref<128x512xf32, #tpu.memory_space<vmem>>, vector<128x512xf32>
    %cst_87 = arith.constant dense<0.000000e+00> : vector<1x512xf32>
    %192 = tpu.matmul %189, %191, %cst_87 {dimension_numbers = #tpu.dot_dimension_numbers<[1], [0], [0], [1], [0, 0, 1, 1], [], []>} : vector<1x128xf32>, vector<128x512xf32>, vector<1x512xf32> -> vector<1x512xf32>
    %c7 = arith.constant 7 : index
    %c0_88 = arith.constant 0 : index
    %193 = vector.load %arg9[%c7, %c0_88] : memref<8x512xf32, #tpu.memory_space<vmem>>, vector<1x512xf32>
    %194 = arith.addf %192, %193 : vector<1x512xf32>
    %195 = math.tanh %194 : vector<1x512xf32>
    %196 = vector.extract_strided_slice %195 {offsets = [0, 0], sizes = [1, 128], strides = [1, 1]} : vector<1x512xf32> to vector<1x128xf32>
    %cst_89 = arith.constant 5.000000e-01 : f32
    %197 = vector.broadcast %cst_89 : f32 to vector<1x128xf32>
    %198 = arith.mulf %197, %196 : vector<1x128xf32>
    %cst_90 = arith.constant 5.000000e-01 : f32
    %199 = vector.broadcast %cst_90 : f32 to vector<1x128xf32>
    %200 = arith.addf %198, %199 : vector<1x128xf32>
    %201 = vector.extract_strided_slice %195 {offsets = [0, 128], sizes = [1, 128], strides = [1, 1]} : vector<1x512xf32> to vector<1x128xf32>
    %cst_91 = arith.constant 5.000000e-01 : f32
    %202 = vector.broadcast %cst_91 : f32 to vector<1x128xf32>
    %203 = arith.mulf %202, %201 : vector<1x128xf32>
    %cst_92 = arith.constant 5.000000e-01 : f32
    %204 = vector.broadcast %cst_92 : f32 to vector<1x128xf32>
    %205 = arith.addf %203, %204 : vector<1x128xf32>
    %206 = vector.extract_strided_slice %195 {offsets = [0, 256], sizes = [1, 128], strides = [1, 1]} : vector<1x512xf32> to vector<1x128xf32>
    %207 = vector.extract_strided_slice %195 {offsets = [0, 384], sizes = [1, 128], strides = [1, 1]} : vector<1x512xf32> to vector<1x128xf32>
    %cst_93 = arith.constant 5.000000e-01 : f32
    %208 = vector.broadcast %cst_93 : f32 to vector<1x128xf32>
    %209 = arith.mulf %208, %207 : vector<1x128xf32>
    %cst_94 = arith.constant 5.000000e-01 : f32
    %210 = vector.broadcast %cst_94 : f32 to vector<1x128xf32>
    %211 = arith.addf %209, %210 : vector<1x128xf32>
    %212 = arith.mulf %205, %187 : vector<1x128xf32>
    %213 = arith.mulf %200, %206 : vector<1x128xf32>
    %214 = arith.addf %212, %213 : vector<1x128xf32>
    %215 = math.tanh %214 : vector<1x128xf32>
    %216 = arith.mulf %211, %215 : vector<1x128xf32>
    %c6_95 = arith.constant 6 : index
    %c0_96 = arith.constant 0 : index
    %217 = vector.load %arg10[%c6_95, %c0_96] : memref<8x128xf32, #tpu.memory_space<vmem>>, vector<1x128xf32>
    tpu.vector_store %arg10[%c6_95, %c0_96], %216 {strides = array<i32>} : memref<8x128xf32, #tpu.memory_space<vmem>>, vector<1x128xf32>,
    %c0_97 = arith.constant 0 : index
    %c0_98 = arith.constant 0 : index
    %218 = vector.load %arg3[%c0_97, %c0_98] : memref<128x512xf32, #tpu.memory_space<vmem>>, vector<128x512xf32>
    %cst_99 = arith.constant dense<0.000000e+00> : vector<1x512xf32>
    %219 = tpu.matmul %216, %218, %cst_99 {dimension_numbers = #tpu.dot_dimension_numbers<[1], [0], [0], [1], [0, 0, 1, 1], [], []>} : vector<1x128xf32>, vector<128x512xf32>, vector<1x512xf32> -> vector<1x512xf32>
    %c0_100 = arith.constant 0 : index
    %c0_101 = arith.constant 0 : index
    %220 = vector.load %arg2[%c0_100, %c0_101] : memref<1x512xf32, #tpu.memory_space<vmem>>, vector<1x512xf32>
    %221 = arith.addf %219, %220 : vector<1x512xf32>
    %222 = math.tanh %221 : vector<1x512xf32>
    %223 = vector.extract_strided_slice %222 {offsets = [0, 0], sizes = [1, 128], strides = [1, 1]} : vector<1x512xf32> to vector<1x128xf32>
    %cst_102 = arith.constant 5.000000e-01 : f32
    %224 = vector.broadcast %cst_102 : f32 to vector<1x128xf32>
    %225 = arith.mulf %224, %223 : vector<1x128xf32>
    %cst_103 = arith.constant 5.000000e-01 : f32
    %226 = vector.broadcast %cst_103 : f32 to vector<1x128xf32>
    %227 = arith.addf %225, %226 : vector<1x128xf32>
    %228 = vector.extract_strided_slice %222 {offsets = [0, 128], sizes = [1, 128], strides = [1, 1]} : vector<1x512xf32> to vector<1x128xf32>
    %cst_104 = arith.constant 5.000000e-01 : f32
    %229 = vector.broadcast %cst_104 : f32 to vector<1x128xf32>
    %230 = arith.mulf %229, %228 : vector<1x128xf32>
    %cst_105 = arith.constant 5.000000e-01 : f32
    %231 = vector.broadcast %cst_105 : f32 to vector<1x128xf32>
    %232 = arith.addf %230, %231 : vector<1x128xf32>
    %233 = vector.extract_strided_slice %222 {offsets = [0, 256], sizes = [1, 128], strides = [1, 1]} : vector<1x512xf32> to vector<1x128xf32>
    %234 = vector.extract_strided_slice %222 {offsets = [0, 384], sizes = [1, 128], strides = [1, 1]} : vector<1x512xf32> to vector<1x128xf32>
    %cst_106 = arith.constant 5.000000e-01 : f32
    %235 = vector.broadcast %cst_106 : f32 to vector<1x128xf32>
    %236 = arith.mulf %235, %234 : vector<1x128xf32>
    %cst_107 = arith.constant 5.000000e-01 : f32
    %237 = vector.broadcast %cst_107 : f32 to vector<1x128xf32>
    %238 = arith.addf %236, %237 : vector<1x128xf32>
    %239 = arith.mulf %232, %214 : vector<1x128xf32>
    %240 = arith.mulf %227, %233 : vector<1x128xf32>
    %241 = arith.addf %239, %240 : vector<1x128xf32>
    %242 = math.tanh %241 : vector<1x128xf32>
    %243 = arith.mulf %238, %242 : vector<1x128xf32>
    %c7_108 = arith.constant 7 : index
    %c0_109 = arith.constant 0 : index
    %244 = vector.load %arg10[%c7_108, %c0_109] : memref<8x128xf32, #tpu.memory_space<vmem>>, vector<1x128xf32>
    tpu.vector_store %arg10[%c7_108, %c0_109], %243 {strides = array<i32>} : memref<8x128xf32, #tpu.memory_space<vmem>>, vector<1x128xf32>,
    %c0_110 = arith.constant 0 : index
    %c0_111 = arith.constant 0 : index
    %245 = vector.load %arg10[%c0_110, %c0_111] : memref<8x128xf32, #tpu.memory_space<vmem>>, vector<8x128xf32>
    %cst_112 = arith.constant 0.000000e+00 : f32
    %246 = vector.broadcast %cst_112 : f32 to vector<8x128xf32>
    %247 = arith.maximumf %245, %246 : vector<8x128xf32>
    %c0_113 = arith.constant 0 : index
    %c0_114 = arith.constant 0 : index
    %248 = vector.load %arg4[%c0_113, %c0_114] : memref<128x12xf32, #tpu.memory_space<vmem>>, vector<128x12xf32>
    %cst_115 = arith.constant dense<0.000000e+00> : vector<8x12xf32>
    %249 = tpu.matmul %247, %248, %cst_115 {dimension_numbers = #tpu.dot_dimension_numbers<[1], [0], [0], [1], [0, 0, 1, 1], [], []>} : vector<8x128xf32>, vector<128x12xf32>, vector<8x12xf32> -> vector<8x12xf32>
    %c0_116 = arith.constant 0 : index
    %c0_117 = arith.constant 0 : index
    %250 = vector.load %arg5[%c0_116, %c0_117] : memref<1x12xf32, #tpu.memory_space<vmem>>, vector<1x12xf32>
    %251 = vector.broadcast %250 : vector<1x12xf32> to vector<8x12xf32>
    %252 = arith.addf %249, %251 : vector<8x12xf32>
    %cst_118 = arith.constant 0.000000e+00 : f32
    %253 = vector.broadcast %cst_118 : f32 to vector<8x12xf32>
    %254 = arith.maximumf %252, %253 : vector<8x12xf32>
    %c0_119 = arith.constant 0 : index
    %c0_120 = arith.constant 0 : index
    %255 = vector.load %arg6[%c0_119, %c0_120] : memref<12x2xf32, #tpu.memory_space<vmem>>, vector<12x2xf32>
    %cst_121 = arith.constant dense<0.000000e+00> : vector<8x2xf32>
    %256 = tpu.matmul %254, %255, %cst_121 {dimension_numbers = #tpu.dot_dimension_numbers<[1], [0], [0], [1], [0, 0, 1, 1], [], []>} : vector<8x12xf32>, vector<12x2xf32>, vector<8x2xf32> -> vector<8x2xf32>
    %c0_122 = arith.constant 0 : index
    %c0_123 = arith.constant 0 : index
    %257 = vector.load %arg7[%c0_122, %c0_123] : memref<1x2xf32, #tpu.memory_space<vmem>>, vector<1x2xf32>
    %258 = vector.broadcast %257 : vector<1x2xf32> to vector<8x2xf32>
    %259 = arith.addf %256, %258 : vector<8x2xf32>
    %c0_124 = arith.constant 0 : index
    %c0_125 = arith.constant 0 : index
    %260 = vector.load %arg8[%c0_124, %c0_125] : memref<8x2xf32, #tpu.memory_space<vmem>>, vector<8x2xf32>
    tpu.vector_store %arg8[%c0_124, %c0_125], %259 {strides = array<i32>} : memref<8x2xf32, #tpu.memory_space<vmem>>, vector<8x2xf32>,
    return
  }
}

</mosaic_0001>

<bundles_post_ra>
// kernel: tpu_custom_call.1
= control target key start
LH: loop header
LB: loop body
LE: loop exit
PB: predicated region body
PF: predicated region fallthrough
CT: control target
= control target key end

     0   :  { %13 = vsyncpa [#allocation5], 0  ;;  %s2573_s27 = smov [#allocation4]   ;;  %s3605_s0 = inlined_call_operand.vmem [shape: f32[8,16], index: 0, kind: input, shape index: {}]   ;;  %s3606_s1 = inlined_call_operand.vmem [shape: f32[16,512], index: 1, kind: input, shape index: {}]   ;;  %s3607_s2 = inlined_call_operand.vmem [shape: f32[1,512], index: 2, kind: input, shape index: {}]   ;;  %s3608_s3 = inlined_call_operand.hbm [shape: f32[128,512], index: 3, kind: input, shape index: {}]   ;;  %s3609_s4 = inlined_call_operand.vmem [shape: f32[128,12], index: 4, kind: input, shape index: {}]   ;;  %s3610_s5 = inlined_call_operand.vmem [shape: f32[1,12], index: 5, kind: input, shape index: {}]   ;;  %s3611_s6 = inlined_call_operand.vmem [shape: f32[12,2], index: 6, kind: input, shape index: {}]   ;;  %s3612_s7 = inlined_call_operand.vmem [shape: f32[1,2], index: 7, kind: input, shape index: {}]   ;;  %s3613_s8 = inlined_call_operand.vmem [shape: f32[8,2], index: 8, kind: output, shape index: {}]  }
   0x1   :  { %s25_s28 = sshll.u32 %s2573_s27, 4  ;;  %s26_s28 = int_to_ptr.vmem [resolvable:$true] %s25_s28 }
   0x2   :  { %s2559_s29 = scalar_lea.vmem %s26_s28, 8192  ;;  %p2564_p1 = scmp.lt.s32.totalorder %s26_s28, %s26_s28 }
   0x3   :  { %p2560_p0 = scmp.ne.s32.totalorder %s26_s28, %s2559_s29  ;;  %p2565_p2 = scmp.lt.s32.totalorder %s2559_s29, %s2559_s29 }
   0x5   :  { %p2566_p3 = por %p2565_p2, %p2564_p1 }
   0x7   :  { %p2567_p4 = pnand %p2566_p3, %p2560_p0 }
   0x9   :  { %2570 = shalt.err (!%p2567_p4)
}
   0xa   :  { %s2574_s30 = smov 512   ;;  %s2575_s9 = smov 32  }
   0xb   :  { %31 = dma.hbm_to_vmem [thread:$0]  %s3608_s3, 8192, %s26_s28, [#allocation5], %s2574_s30, %s2574_s30, %s2575_s9  }
   0xc   :  { %2571 = dma.done.wait [#allocation5], 8192  }
   0xd   :  { %2572 = vsyncadd [#allocation5], 4294959104  ;;  %v3614_v0 = vmov 0.0   ;;  %v49_v1 = vld [vmem:[%s3606_s1 + $0x28] sm:$0xff]  ;;  %v48_v2 = vld [vmem:[%s3606_s1 + $0x20] sm:$0xff]  ;;  %vm74_vm0 = vcmask 130048  }
   0xe   :  { %142 = vmatprep.mubr.f32.mxu1 %v3614_v0  ;;  %395 = vmatprep.mubr.f32.mxu0 %v3614_v0  ;;  %v45_v3 = vld [vmem:[%s3606_s1 + $0x8] sm:$0xff]  ;;  %v44_v4 = vld [vmem:[%s3606_s1] sm:$0xff]  ;;  %v51_v6 = vld [vmem:[%s3606_s1 + $0x38] sm:$0xff]  ;;  %vm2577_vm2 = vmmov 0   ;;  %vm2312_vm3 = vcmask 1043456   ;;  %vm2308_vm4 = vcmask 97280  }
   0xf   :  { %106 = vmatprep.subr.mxu1 %v49_v1  ;;  %v43_v5 = vld [vmem:[%s3605_s0] sm:$0xff]  ;;  %v50_v7 = vld [vmem:[%s3606_s1 + $0x30] sm:$0xff]  ;;  %v47_v8 = vld [vmem:[%s3606_s1 + $0x18] sm:$0xff]  ;;  %vm2386_vm5 = vcmask 15360  }
  0x10   :  { %107 = vmatpush1.msra.mxu1 %v48_v2  ;;  %v46_v9 = vld [vmem:[%s3606_s1 + $0x10] sm:$0xff]  ;;  %v2659_v11 = vld [vmem:[#allocation4 + $0x1f8] sm:$0xff]  ;;  %v2661_v12 = vld [vmem:[#allocation4 + $0x1e0] sm:$0xff] }
  0x11   :  { %108 = vmatprep.subr.mxu1 %v45_v3  ;;  %v2657_v10 = vld [vmem:[#allocation4 + $0x1e8] sm:$0xff]  ;;  %3719 = vst [vmem:[#allocation8_spill] sm:$0xff] %v2659_v11  ;;  %v2665_v13 = vld [vmem:[#allocation4 + $0x1f0] sm:$0xff]  ;;  %v2669_v15 = vld [vmem:[#allocation4 + $0x1d8] sm:$0xff] }
  0x12   :  { %109 = vmatpush1.msra.mxu1 %v44_v4  ;;  %3718 = vst [vmem:[#allocation7_spill] sm:$0xff] %v2657_v10  ;;  %331 = vmatprep.subr.mxu0 %v2657_v10  ;;  %v2667_v14 = vld [vmem:[#allocation4 + $0x1c8] sm:$0xff]  ;;  %v2673_v16 = vld [vmem:[#allocation4 + $0x1c0] sm:$0xff]  ;;  %v2675_v17 = vld [vmem:[#allocation4 + $0x1d0] sm:$0xff] }
  0x13   :  { %2393 = vmatmul.mubr.msk.f32.vlgmr.msra.gmra.mxu1 %vm74_vm0, %v43_v5  ;;  %177 = vmatprep.subr.mxu1 %v51_v6  ;;  %v2677_v18 = vld [vmem:[#allocation4 + $0x1a8] sm:$0xff]  ;;  %v2681_v19 = vld [vmem:[#allocation4 + $0x1b8] sm:$0xff]  ;;  %v2683_v20 = vld [vmem:[#allocation4 + $0x1a0] sm:$0xff] }
  0x14   :  { %178 = vmatpush1.msra.mxu1 %v50_v7  ;;  %213 = vmatprep.mubr.f32.mxu1 %v3614_v0  ;;  %v2685_v21 = vld [vmem:[#allocation4 + $0x1b0] sm:$0xff]  ;;  %v2689_v22 = vld [vmem:[#allocation4 + $0x188] sm:$0xff]  ;;  %v2691_v23 = vld [vmem:[#allocation4 + $0x198] sm:$0xff] }
  0x15   :  { %179 = vmatprep.subr.mxu1 %v47_v8  ;;  %332 = vmatpush1.msra.mxu0 %v2661_v12  ;;  %v2695_v24 = vld [vmem:[#allocation4 + $0x180] sm:$0xff]  ;;  %v2697_v25 = vld [vmem:[#allocation4 + $0x190] sm:$0xff]  ;;  %v2701_v26 = vld [vmem:[#allocation4 + $0x168] sm:$0xff] }
  0x16   :  { %180 = vmatpush1.msra.mxu1 %v46_v9  ;;  %333 = vmatprep.subr.mxu0 %v2667_v14  ;;  %v2703_v27 = vld [vmem:[#allocation4 + $0x178] sm:$0xff]  ;;  %v2707_v28 = vld [vmem:[#allocation4 + $0x160] sm:$0xff]  ;;  %v2709_v29 = vld [vmem:[#allocation4 + $0x170] sm:$0xff] }
  0x17   :  { %2394 = vmatmul.mubr.msk.f32.vlgmr.msra.gmra.mxu1 %vm74_vm0, %v43_v5  ;;  %402 = vmatprep.subr.mxu1 %v2659_v11  ;;  %v2713_v30 = vld [vmem:[#allocation4 + $0x148] sm:$0xff]  ;;  %v2715_v31 = vld [vmem:[#allocation4 + $0x158] sm:$0xff]  ;;  %v2719_v32 = vld [vmem:[#allocation4 + $0x140] sm:$0xff] }
  0x18   :  { %466 = vmatprep.mubr.f32.mxu1 %v3614_v0  ;;  %403 = vmatpush1.msra.mxu1 %v2665_v13  ;;  %v2721_v33 = vld [vmem:[#allocation4 + $0x150] sm:$0xff]  ;;  %v2725_v34 = vld [vmem:[#allocation4 + $0x128] sm:$0xff]  ;;  %v2727_v35 = vld [vmem:[#allocation4 + $0x138] sm:$0xff] }
  0x19   :  { %404 = vmatprep.subr.mxu1 %v2669_v15  ;;  %334 = vmatpush1.msra.mxu0 %v2673_v16  ;;  %v2731_v36 = vld [vmem:[#allocation4 + $0x120] sm:$0xff]  ;;  %v2733_v37 = vld [vmem:[#allocation4 + $0x130] sm:$0xff]  ;;  %v2737_v38 = vld [vmem:[#allocation4 + $0x108] sm:$0xff] }
  0x1a   :  { %405 = vmatpush1.msra.mxu1 %v2675_v17  ;;  %335 = vmatprep.subr.mxu0 %v2677_v18  ;;  %v2739_v39 = vld [vmem:[#allocation4 + $0x118] sm:$0xff]  ;;  %v2743_v40 = vld [vmem:[#allocation4 + $0x100] sm:$0xff]  ;;  %v2745_v41 = vld [vmem:[#allocation4 + $0x110] sm:$0xff] }
  0x1b   :  { %406 = vmatprep.subr.mxu1 %v2681_v19  ;;  %336 = vmatpush1.msra.mxu0 %v2683_v20  ;;  %v2749_v42 = vld [vmem:[#allocation4 + $0xe8] sm:$0xff]  ;;  %v2751_v43 = vld [vmem:[#allocation4 + $0xf8] sm:$0xff]  ;;  %v2755_v44 = vld [vmem:[#allocation4 + $0xe0] sm:$0xff] }
  0x1c   :  { %407 = vmatpush1.msra.mxu1 %v2685_v21  ;;  %337 = vmatprep.subr.mxu0 %v2689_v22  ;;  %v2757_v45 = vld [vmem:[#allocation4 + $0xf0] sm:$0xff]  ;;  %v2761_v46 = vld [vmem:[#allocation4 + $0xc8] sm:$0xff]  ;;  %v2763_v47 = vld [vmem:[#allocation4 + $0xd8] sm:$0xff] }
  0x1d   :  { %408 = vmatprep.subr.mxu1 %v2691_v23  ;;  %338 = vmatpush1.msra.mxu0 %v2695_v24  ;;  %v2767_v48 = vld [vmem:[#allocation4 + $0xc0] sm:$0xff]  ;;  %v2769_v49 = vld [vmem:[#allocation4 + $0xd0] sm:$0xff]  ;;  %v2773_v50 = vld [vmem:[#allocation4 + $0xa8] sm:$0xff] }
  0x1e   :  { %409 = vmatpush1.msra.mxu1 %v2697_v25  ;;  %339 = vmatprep.subr.mxu0 %v2701_v26  ;;  %v2775_v51 = vld [vmem:[#allocation4 + $0xb8] sm:$0xff]  ;;  %v2779_v52 = vld [vmem:[#allocation4 + $0xa0] sm:$0xff]  ;;  %v2781_v53 = vld [vmem:[#allocation4 + $0xb0] sm:$0xff] }
  0x1f   :  { %410 = vmatprep.subr.mxu1 %v2703_v27  ;;  %340 = vmatpush1.msra.mxu0 %v2707_v28  ;;  %v2785_v54 = vld [vmem:[#allocation4 + $0x88] sm:$0xff]  ;;  %v2787_v55 = vld [vmem:[#allocation4 + $0x98] sm:$0xff]  ;;  %v2791_v56 = vld [vmem:[#allocation4 + $0x80] sm:$0xff] }
  0x20   :  { %411 = vmatpush1.msra.mxu1 %v2709_v29  ;;  %341 = vmatprep.subr.mxu0 %v2713_v30  ;;  %3720 = vst [vmem:[#allocation9_spill] sm:$0xff] %v2785_v54  ;;  %3721 = vst [vmem:[#allocation10_spill] sm:$0xff] %v2787_v55  ;;  %v2793_v57 = vld [vmem:[#allocation4 + $0x90] sm:$0xff]  ;;  %v2797_v58 = vld [vmem:[#allocation4 + $0x68] sm:$0xff] }
  0x21   :  { %412 = vmatprep.subr.mxu1 %v2715_v31  ;;  %342 = vmatpush1.msra.mxu0 %v2719_v32  ;;  %3722 = vst [vmem:[#allocation11_spill] sm:$0xff] %v2791_v56  ;;  %3723 = vst [vmem:[#allocation12_spill] sm:$0xff] %v2793_v57  ;;  %v2799_v59 = vld [vmem:[#allocation4 + $0x78] sm:$0xff]  ;;  %v2803_v60 = vld [vmem:[#allocation4 + $0x60] sm:$0xff] }
  0x22   :  { %413 = vmatpush1.msra.mxu1 %v2721_v33  ;;  %343 = vmatprep.subr.mxu0 %v2725_v34  ;;  %3724 = vst [vmem:[#allocation13_spill] sm:$0xff] %v2797_v58  ;;  %3725 = vst [vmem:[#allocation14_spill] sm:$0xff] %v2799_v59  ;;  %v2805_v61 = vld [vmem:[#allocation4 + $0x70] sm:$0xff]  ;;  %v2809_v62 = vld [vmem:[#allocation4 + $0x48] sm:$0xff] }
  0x23   :  { %414 = vmatprep.subr.mxu1 %v2727_v35  ;;  %344 = vmatpush1.msra.mxu0 %v2731_v36  ;;  %3726 = vst [vmem:[#allocation15_spill] sm:$0xff] %v2803_v60  ;;  %3727 = vst [vmem:[#allocation16_spill] sm:$0xff] %v2805_v61  ;;  %v2811_v63 = vld [vmem:[#allocation4 + $0x58] sm:$0xff]  ;;  %v2815_v1 = vld [vmem:[#allocation4 + $0x40] sm:$0xff] }
  0x24   :  { %415 = vmatpush1.msra.mxu1 %v2733_v37  ;;  %345 = vmatprep.subr.mxu0 %v2737_v38  ;;  %3728 = vst [vmem:[#allocation17_spill] sm:$0xff] %v2809_v62  ;;  %3729 = vst [vmem:[#allocation18_spill] sm:$0xff] %v2811_v63  ;;  %v2817_v2 = vld [vmem:[#allocation4 + $0x50] sm:$0xff]  ;;  %v2821_v3 = vld [vmem:[#allocation4 + $0x28] sm:$0xff] }
  0x25   :  { %416 = vmatprep.subr.mxu1 %v2739_v39  ;;  %346 = vmatpush1.msra.mxu0 %v2743_v40  ;;  %3730 = vst [vmem:[#allocation19_spill] sm:$0xff] %v2815_v1  ;;  %3731 = vst [vmem:[#allocation20_spill] sm:$0xff] %v2817_v2  ;;  %v2823_v4 = vld [vmem:[#allocation4 + $0x38] sm:$0xff]  ;;  %v2827_v5 = vld [vmem:[#allocation4 + $0x20] sm:$0xff] }
  0x26   :  { %417 = vmatpush1.msra.mxu1 %v2745_v41  ;;  %347 = vmatprep.subr.mxu0 %v2749_v42  ;;  %3732 = vst [vmem:[#allocation21_spill] sm:$0xff] %v2821_v3  ;;  %3733 = vst [vmem:[#allocation22_spill] sm:$0xff] %v2823_v4  ;;  %v2829_v6 = vld [vmem:[#allocation4 + $0x30] sm:$0xff]  ;;  %v2833_v7 = vld [vmem:[#allocation4 + $0x8] sm:$0xff] }
  0x27   :  { %418 = vmatprep.subr.mxu1 %v2751_v43  ;;  %348 = vmatpush1.msra.mxu0 %v2755_v44  ;;  %3734 = vst [vmem:[#allocation23_spill] sm:$0xff] %v2827_v5  ;;  %3735 = vst [vmem:[#allocation24_spill] sm:$0xff] %v2829_v6  ;;  %v2835_v8 = vld [vmem:[#allocation4 + $0x18] sm:$0xff]  ;;  %v2839_v9 = vld [vmem:[#allocation4] sm:$0xff] }
  0x28   :  { %419 = vmatpush1.msra.mxu1 %v2757_v45  ;;  %349 = vmatprep.subr.mxu0 %v2761_v46  ;;  %3736 = vst [vmem:[#allocation25_spill] sm:$0xff] %v2833_v7  ;;  %3737 = vst [vmem:[#allocation26_spill] sm:$0xff] %v2835_v8  ;;  %v2841_v0 = vld [vmem:[#allocation4 + $0x10] sm:$0xff] }
  0x29   :  { %420 = vmatprep.subr.mxu1 %v2763_v47  ;;  %350 = vmatpush1.msra.mxu0 %v2767_v48  ;;  %3738 = vst [vmem:[#allocation27_spill] sm:$0xff] %v2839_v9  ;;  %3739 = vst [vmem:[#allocation28_spill] sm:$0xff] %v2841_v0 }
  0x2a   :  { %421 = vmatpush1.msra.mxu1 %v2769_v49  ;;  %351 = vmatprep.subr.mxu0 %v2773_v50 }
  0x2b   :  { %422 = vmatprep.subr.mxu1 %v2775_v51  ;;  %352 = vmatpush1.msra.mxu0 %v2779_v52 }
  0x2c   :  { %423 = vmatpush1.msra.mxu1 %v2781_v53  ;;  %353 = vmatprep.subr.mxu0 %v2785_v54 }
  0x2d   :  { %424 = vmatprep.subr.mxu1 %v2787_v55  ;;  %354 = vmatpush1.msra.mxu0 %v2791_v56 }
  0x2e   :  { %425 = vmatpush1.msra.mxu1 %v2793_v57  ;;  %355 = vmatprep.subr.mxu0 %v2797_v58 }
  0x2f   :  { %426 = vmatprep.subr.mxu1 %v2799_v59  ;;  %356 = vmatpush1.msra.mxu0 %v2803_v60 }
  0x30   :  { %427 = vmatpush1.msra.mxu1 %v2805_v61  ;;  %357 = vmatprep.subr.mxu0 %v2809_v62 }
  0x31   :  { %428 = vmatprep.subr.mxu1 %v2811_v63  ;;  %358 = vmatpush1.msra.mxu0 %v2815_v1 }
  0x32   :  { %429 = vmatpush1.msra.mxu1 %v2817_v2  ;;  %359 = vmatprep.subr.mxu0 %v2821_v3 }
  0x33   :  { %430 = vmatprep.subr.mxu1 %v2823_v4  ;;  %360 = vmatpush1.msra.mxu0 %v2827_v5  ;;  %v54_v4 = vlaneseq }
  0x34   :  { %431 = vmatpush1.msra.mxu1 %v2829_v6  ;;  %361 = vmatprep.subr.mxu0 %v2833_v7  ;;  %v52_v6 = vld [vmem:[%s3607_s2] sm:$0xf] }
  0x35   :  { %432 = vmatprep.subr.mxu1 %v2835_v8  ;;  %362 = vmatpush1.msra.mxu0 %v2839_v9  ;;  %v55_v3 = vshrl.u32 %v54_v4, 7 }
  0x36   :  { %433 = vmatpush1.msra.mxu1 %v2841_v0  ;;  %576 = vmatprep.subr.mxu0 %v2657_v10 }
  0x37   :  { %647 = vmatprep.subr.mxu1 %v2659_v11  ;;  %v2851_v2 = vsub.s32 0, %v55_v3  ;;  %v2856_v5 = vsub.s32 1, %v55_v3  ;;  %v2859_v7 = vsub.s32 2, %v55_v3  ;;  %v2862_v9 = vsub.s32 3, %v55_v3 }
  0x38   :  { %v225_v3 = vand.u32 127, %v54_v4  ;;  %v3748_v4 = vld [vmem:[#allocation15_spill] sm:$0xff] }
  0x39   :  { %3740 = vst [vmem:[#allocation29_spill] sm:$0xff] %v2851_v2  ;;  %3741 = vst [vmem:[#allocation30_spill] sm:$0xff] %v2856_v5  ;;  %v57_v8 = vrot.slane %v52_v6, %v2851_v2  ;;  %v61_v0 = vrot.slane %v52_v6, %v2856_v5  ;;  %v65_v1 = vrot.slane %v52_v6, %v2859_v7 }
  0x3a   :  { %3742 = vst [vmem:[#allocation31_spill] sm:$0xff] %v2859_v7  ;;  %v69_v61 = vrot.slane %v52_v6, %v2862_v9  ;;  %vm226_vm1 = vcmp.lt.s32.totalorder %v225_v3, 48  ;;  %v3750_v6 = vld [vmem:[#allocation17_spill] sm:$0xff]  ;;  %v3752_v3 = vld [vmem:[#allocation19_spill] sm:$0xff] }
  0xd3   :  { %v144_v10 = vpop.f32.mrf.mxu1 }
  0xd4   :  { %v145_v11 = vadd.f32 %v144_v10, %v57_v8  ;;  %v3743_v10 = vmov 0.0  }
  0xd5   :  { %v146_v63 = vpop.f32.mrf.mxu1  ;;  %v2395_v8 = vsel %vm226_vm1, 1.0, %v3743_v10 }
  0xd6   :  { %220 = vst [vmem:[#allocation2] sm:$0xff] %v145_v11  ;;  %v147_v62 = vadd.f32 %v146_v63, %v61_v0 }
  0xd7   :  { %v215_v60 = vpop.f32.mrf.mxu1 }
  0xd8   :  { %221 = vst [vmem:[#allocation2 + $0x8] sm:$0xff] %v147_v62  ;;  %v216_v59 = vadd.f32 %v215_v60, %v65_v1  ;;  %v3746_v1 = vld [vmem:[#allocation13_spill] sm:$0xff] }
  0xd9   :  { %v217_v58 = vpop.f32.mrf.mxu1 }
  0xda   :  { %222 = vst [vmem:[#allocation2 + $0x10] sm:$0xff] %v216_v59  ;;  %v218_v2 = vadd.f32 %v217_v58, %v69_v61 }
  0xdc   :  { %223 = vst [vmem:[#allocation2 + $0x18] sm:$0xff] %v218_v2  ;;  %v3747_v2 = vld [vmem:[#allocation14_spill] sm:$0xff] }
  0xe3   :  { %v229_v57 = vld [vmem:[#allocation2] ss:$8 sm:$0xf] }
  0xe4   :  { %2467 = vtanh.f32 %v229_v57  ;;  %v3745_v57 = vld [vmem:[#allocation12_spill] sm:$0xff] }
  0xf1   :  { %v2468_v5 = vpop.eup %2467 }
  0xf2   :  { %v231_v7 = vmul.f32 0.5, %v2468_v5  ;;  %v234_v56 = vrot.slane %v2468_v5, 2  ;;  %v237_v60 = vrot.slane %v2468_v5, 3  ;;  %v3749_v5 = vld [vmem:[#allocation16_spill] sm:$0xff] }
  0xf4   :  { %v232_v11 = vadd.f32 0.5, %v231_v7  ;;  %v236_v0 = vmul.f32 %v2395_v8, %v234_v56  ;;  %v239_v62 = vmul.f32 0.5, %v237_v60  ;;  %v3744_v56 = vld [vmem:[#allocation11_spill] sm:$0xff]  ;;  %v3751_v7 = vld [vmem:[#allocation18_spill] sm:$0xff]  ;;  %v3753_v8 = vld [vmem:[#allocation20_spill] sm:$0xff] }
  0xf5   :  { %v3756_v60 = vld [vmem:[#allocation23_spill] sm:$0xff] }
  0xf6   :  { %v2867_v63 = vmul.f32 %v236_v0, %v232_v11  ;;  %v240_v59 = vadd.f32 0.5, %v239_v62  ;;  %v3754_v11 = vld [vmem:[#allocation21_spill] sm:$0xff]  ;;  %v3755_v0 = vld [vmem:[#allocation22_spill] sm:$0xff]  ;;  %v3757_v62 = vld [vmem:[#allocation24_spill] sm:$0xff] }
  0xf8   :  { %2469 = vtanh.f32 %v2867_v63 }
 0x105   :  { %v2470_v58 = vpop.eup %2469 }
 0x106   :  { %v243_v61 = vmul.f32 %v2470_v58, %v240_v59  ;;  %v3758_v59 = vld [vmem:[#allocation25_spill] sm:$0xff]  ;;  %v3759_v58 = vld [vmem:[#allocation26_spill] sm:$0xff] }
 0x108   :  { %396 = vmatmul.mubr.f32.vlgmr.msra.gmra.mxu0 %v243_v61  ;;  %467 = vmatmul.mubr.f32.vlgmr.msra.gmra.mxu1 %v243_v61  ;;  %v3760_v61 = vld [vmem:[#allocation27_spill] sm:$0xff] }
 0x109   :  { %577 = vmatpush1.msra.mxu0 %v2661_v12  ;;  %648 = vmatpush1.msra.mxu1 %v2665_v13 }
 0x10a   :  { %578 = vmatprep.subr.mxu0 %v2667_v14  ;;  %649 = vmatprep.subr.mxu1 %v2669_v15 }
 0x10b   :  { %579 = vmatpush1.msra.mxu0 %v2673_v16  ;;  %650 = vmatpush1.msra.mxu1 %v2675_v17 }
 0x10c   :  { %580 = vmatprep.subr.mxu0 %v2677_v18  ;;  %651 = vmatprep.subr.mxu1 %v2681_v19 }
 0x10d   :  { %581 = vmatpush1.msra.mxu0 %v2683_v20  ;;  %652 = vmatpush1.msra.mxu1 %v2685_v21 }
 0x10e   :  { %582 = vmatprep.subr.mxu0 %v2689_v22  ;;  %653 = vmatprep.subr.mxu1 %v2691_v23 }
 0x10f   :  { %583 = vmatpush1.msra.mxu0 %v2695_v24  ;;  %654 = vmatpush1.msra.mxu1 %v2697_v25 }
 0x110   :  { %584 = vmatprep.subr.mxu0 %v2701_v26  ;;  %655 = vmatprep.subr.mxu1 %v2703_v27 }
 0x111   :  { %585 = vmatpush1.msra.mxu0 %v2707_v28  ;;  %656 = vmatpush1.msra.mxu1 %v2709_v29 }
 0x112   :  { %586 = vmatprep.subr.mxu0 %v2713_v30  ;;  %657 = vmatprep.subr.mxu1 %v2715_v31 }
 0x113   :  { %587 = vmatpush1.msra.mxu0 %v2719_v32  ;;  %658 = vmatpush1.msra.mxu1 %v2721_v33 }
 0x114   :  { %588 = vmatprep.subr.mxu0 %v2725_v34  ;;  %659 = vmatprep.subr.mxu1 %v2727_v35 }
 0x115   :  { %589 = vmatpush1.msra.mxu0 %v2731_v36  ;;  %660 = vmatpush1.msra.mxu1 %v2733_v37 }
 0x116   :  { %590 = vmatprep.subr.mxu0 %v2737_v38  ;;  %661 = vmatprep.subr.mxu1 %v2739_v39 }
 0x117   :  { %591 = vmatpush1.msra.mxu0 %v2743_v40  ;;  %662 = vmatpush1.msra.mxu1 %v2745_v41 }
 0x118   :  { %592 = vmatprep.subr.mxu0 %v2749_v42  ;;  %663 = vmatprep.subr.mxu1 %v2751_v43 }
 0x119   :  { %593 = vmatpush1.msra.mxu0 %v2755_v44  ;;  %664 = vmatpush1.msra.mxu1 %v2757_v45 }
 0x11a   :  { %594 = vmatprep.subr.mxu0 %v2761_v46  ;;  %665 = vmatprep.subr.mxu1 %v2763_v47 }
 0x11b   :  { %595 = vmatpush1.msra.mxu0 %v2767_v48  ;;  %666 = vmatpush1.msra.mxu1 %v2769_v49 }
 0x11c   :  { %596 = vmatprep.subr.mxu0 %v2773_v50  ;;  %667 = vmatprep.subr.mxu1 %v2775_v51 }
 0x11d   :  { %597 = vmatpush1.msra.mxu0 %v2779_v52  ;;  %668 = vmatpush1.msra.mxu1 %v2781_v53 }
 0x11e   :  { %598 = vmatprep.subr.mxu0 %v2785_v54  ;;  %669 = vmatprep.subr.mxu1 %v2787_v55 }
 0x11f   :  { %599 = vmatpush1.msra.mxu0 %v3744_v56  ;;  %670 = vmatpush1.msra.mxu1 %v3745_v57 }
 0x120   :  { %600 = vmatprep.subr.mxu0 %v3746_v1  ;;  %671 = vmatprep.subr.mxu1 %v3747_v2 }
 0x121   :  { %601 = vmatpush1.msra.mxu0 %v3748_v4  ;;  %672 = vmatpush1.msra.mxu1 %v3749_v5 }
 0x122   :  { %602 = vmatprep.subr.mxu0 %v3750_v6  ;;  %673 = vmatprep.subr.mxu1 %v3751_v7  ;;  %v3761_v7 = vld [vmem:[#allocation28_spill] sm:$0xff] }
 0x123   :  { %603 = vmatpush1.msra.mxu0 %v3752_v3  ;;  %674 = vmatpush1.msra.mxu1 %v3753_v8  ;;  %v3762_v8 = vld [vmem:[#allocation7_spill] sm:$0xff] }
 0x124   :  { %604 = vmatprep.subr.mxu0 %v3754_v11  ;;  %675 = vmatprep.subr.mxu1 %v3755_v0  ;;  %v3763_v11 = vld [vmem:[#allocation8_spill] sm:$0xff] }
 0x125   :  { %605 = vmatpush1.msra.mxu0 %v3756_v60  ;;  %676 = vmatpush1.msra.mxu1 %v3757_v62  ;;  %v309_v0 = vld [vmem:[#allocation2 + $0x1] ss:$8 sm:$0xf] }
 0x126   :  { %606 = vmatprep.subr.mxu0 %v3758_v59  ;;  %677 = vmatprep.subr.mxu1 %v3759_v58  ;;  %v3764_v60 = vld [vmem:[#allocation29_spill] sm:$0xff]  ;;  %v3765_v59 = vld [vmem:[#allocation30_spill] sm:$0xff] }
 0x127   :  { %607 = vmatpush1.msra.mxu0 %v3760_v61  ;;  %640 = vmatprep.mubr.f32.mxu0 %v3743_v10  ;;  %v314_v3 = vrot.slane %v309_v0, %v3764_v60  ;;  %v318_v5 = vrot.slane %v309_v0, %v3765_v59  ;;  %v3766_v61 = vld [vmem:[#allocation31_spill] sm:$0xff] }
 0x128   :  { %678 = vmatpush1.msra.mxu1 %v3761_v7  ;;  %711 = vmatprep.mubr.f32.mxu1 %v3743_v10  ;;  %v322_v2 = vrot.slane %v309_v0, %v3766_v61 }
 0x129   :  { %821 = vmatprep.subr.mxu0 %v3762_v8  ;;  %892 = vmatprep.subr.mxu1 %v3763_v11  ;;  %v326_v8 = vrot.slane %v309_v0, %v2862_v9  ;;  %v3775_v0 = vld [vmem:[#allocation17_spill] sm:$0xff] }
 0x1c8   :  { %v397_v62 = vpop.f32.mrf.mxu0  ;;  %v468_v58 = vpop.f32.mrf.mxu1 }
 0x1c9   :  { %v398_v6 = vadd.f32 %v397_v62, %v314_v3  ;;  %v469_v7 = vadd.f32 %v468_v58, %v322_v2  ;;  %v3778_v58 = vld [vmem:[#allocation20_spill] sm:$0xff] }
 0x1ca   :  { %v399_v4 = vpop.f32.mrf.mxu0  ;;  %v470_v10 = vpop.f32.mrf.mxu1 }
 0x1cb   :  { %2471 = vtanh.f32 %v398_v6  ;;  %v400_v1 = vadd.f32 %v399_v4, %v318_v5  ;;  %v471_v11 = vadd.f32 %v470_v10, %v326_v8  ;;  %v3773_v8 = vld [vmem:[#allocation15_spill] sm:$0xff] }
 0x1cd   :  { %2473 = vtanh.f32 %v400_v1 }
 0x1ce   :  { %2475 = vtanh.f32 %v469_v7  ;;  %v3772_v7 = vld [vmem:[#allocation14_spill] sm:$0xff] }
 0x1cf   :  { %2477 = vtanh.f32 %v471_v11  ;;  %v3774_v11 = vld [vmem:[#allocation16_spill] sm:$0xff] }
 0x1d8   :  { %v2472_v57 = vpop.eup %2471 }
 0x1d9   :  { %v477_v56 = vmul.f32 0.5, %v2472_v57  ;;  %v3771_v57 = vld [vmem:[#allocation13_spill] sm:$0xff] }
 0x1da   :  { %v2474_v60 = vpop.eup %2473 }
 0x1db   :  { %v478_v55 = vadd.f32 0.5, %v477_v56  ;;  %v479_v3 = vmul.f32 0.5, %v2474_v60  ;;  %v2476_v59 = vpop.eup %2475  ;;  %v3770_v56 = vld [vmem:[#allocation12_spill] sm:$0xff]  ;;  %v3776_v60 = vld [vmem:[#allocation18_spill] sm:$0xff] }
 0x1dc   :  { %v2478_v1 = vpop.eup %2477 }
 0x1dd   :  { %v480_v62 = vadd.f32 0.5, %v479_v3  ;;  %v484_v54 = vmul.f32 %v2476_v59, %v478_v55  ;;  %v481_v2 = vmul.f32 0.5, %v2478_v1  ;;  %v3768_v55 = vld [vmem:[#allocation10_spill] sm:$0xff]  ;;  %v3777_v59 = vld [vmem:[#allocation19_spill] sm:$0xff]  ;;  %v3779_v3 = vld [vmem:[#allocation21_spill] sm:$0xff] }
 0x1de   :  { %v3782_v1 = vld [vmem:[#allocation24_spill] sm:$0xff] }
 0x1df   :  { %v483_v6 = vmul.f32 %v480_v62, %v2867_v63  ;;  %v482_v4 = vadd.f32 0.5, %v481_v2  ;;  %v3769_v63 = vld [vmem:[#allocation11_spill] sm:$0xff]  ;;  %v3780_v62 = vld [vmem:[#allocation22_spill] sm:$0xff]  ;;  %v3783_v2 = vld [vmem:[#allocation25_spill] sm:$0xff] }
 0x1e1   :  { %v2941_v61 = vadd.f32 %v484_v54, %v483_v6  ;;  %v3767_v54 = vld [vmem:[#allocation9_spill] sm:$0xff]  ;;  %v3781_v6 = vld [vmem:[#allocation23_spill] sm:$0xff] }
 0x1e3   :  { %2479 = vtanh.f32 %v2941_v61 }
 0x1f0   :  { %v2480_v5 = vpop.eup %2479 }
 0x1f1   :  { %v487_v10 = vmul.f32 %v2480_v5, %v482_v4  ;;  %v3784_v4 = vld [vmem:[#allocation26_spill] sm:$0xff]  ;;  %v3785_v5 = vld [vmem:[#allocation27_spill] sm:$0xff] }
 0x1f3   :  { %488 = vst [vmem:[#allocation3] sm:$0x1] %v487_v10  ;;  %641 = vmatmul.mubr.f32.vlgmr.msra.gmra.mxu0 %v487_v10  ;;  %712 = vmatmul.mubr.f32.vlgmr.msra.gmra.mxu1 %v487_v10  ;;  %v3786_v10 = vmov 0.0  }
 0x1f4   :  { %822 = vmatpush1.msra.mxu0 %v2661_v12  ;;  %893 = vmatpush1.msra.mxu1 %v2665_v13 }
 0x1f5   :  { %823 = vmatprep.subr.mxu0 %v2667_v14  ;;  %894 = vmatprep.subr.mxu1 %v2669_v15 }
 0x1f6   :  { %824 = vmatpush1.msra.mxu0 %v2673_v16  ;;  %895 = vmatpush1.msra.mxu1 %v2675_v17 }
 0x1f7   :  { %825 = vmatprep.subr.mxu0 %v2677_v18  ;;  %896 = vmatprep.subr.mxu1 %v2681_v19 }
 0x1f8   :  { %826 = vmatpush1.msra.mxu0 %v2683_v20  ;;  %897 = vmatpush1.msra.mxu1 %v2685_v21 }
 0x1f9   :  { %827 = vmatprep.subr.mxu0 %v2689_v22  ;;  %898 = vmatprep.subr.mxu1 %v2691_v23 }
 0x1fa   :  { %828 = vmatpush1.msra.mxu0 %v2695_v24  ;;  %899 = vmatpush1.msra.mxu1 %v2697_v25 }
 0x1fb   :  { %829 = vmatprep.subr.mxu0 %v2701_v26  ;;  %900 = vmatprep.subr.mxu1 %v2703_v27 }
 0x1fc   :  { %830 = vmatpush1.msra.mxu0 %v2707_v28  ;;  %901 = vmatpush1.msra.mxu1 %v2709_v29 }
 0x1fd   :  { %831 = vmatprep.subr.mxu0 %v2713_v30  ;;  %902 = vmatprep.subr.mxu1 %v2715_v31 }
 0x1fe   :  { %832 = vmatpush1.msra.mxu0 %v2719_v32  ;;  %903 = vmatpush1.msra.mxu1 %v2721_v33 }
 0x1ff   :  { %833 = vmatprep.subr.mxu0 %v2725_v34  ;;  %904 = vmatprep.subr.mxu1 %v2727_v35 }
 0x200   :  { %834 = vmatpush1.msra.mxu0 %v2731_v36  ;;  %905 = vmatpush1.msra.mxu1 %v2733_v37 }
 0x201   :  { %835 = vmatprep.subr.mxu0 %v2737_v38  ;;  %906 = vmatprep.subr.mxu1 %v2739_v39 }
 0x202   :  { %836 = vmatpush1.msra.mxu0 %v2743_v40  ;;  %907 = vmatpush1.msra.mxu1 %v2745_v41 }
 0x203   :  { %837 = vmatprep.subr.mxu0 %v2749_v42  ;;  %908 = vmatprep.subr.mxu1 %v2751_v43 }
 0x204   :  { %838 = vmatpush1.msra.mxu0 %v2755_v44  ;;  %909 = vmatpush1.msra.mxu1 %v2757_v45 }
 0x205   :  { %839 = vmatprep.subr.mxu0 %v2761_v46  ;;  %910 = vmatprep.subr.mxu1 %v2763_v47 }
 0x206   :  { %840 = vmatpush1.msra.mxu0 %v2767_v48  ;;  %911 = vmatpush1.msra.mxu1 %v2769_v49 }
 0x207   :  { %841 = vmatprep.subr.mxu0 %v2773_v50  ;;  %912 = vmatprep.subr.mxu1 %v2775_v51 }
 0x208   :  { %842 = vmatpush1.msra.mxu0 %v2779_v52  ;;  %913 = vmatpush1.msra.mxu1 %v2781_v53 }
 0x209   :  { %843 = vmatprep.subr.mxu0 %v3767_v54  ;;  %914 = vmatprep.subr.mxu1 %v3768_v55 }
 0x20a   :  { %844 = vmatpush1.msra.mxu0 %v3769_v63  ;;  %915 = vmatpush1.msra.mxu1 %v3770_v56 }
 0x20b   :  { %845 = vmatprep.subr.mxu0 %v3771_v57  ;;  %916 = vmatprep.subr.mxu1 %v3772_v7 }
 0x20c   :  { %846 = vmatpush1.msra.mxu0 %v3773_v8  ;;  %917 = vmatpush1.msra.mxu1 %v3774_v11 }
 0x20d   :  { %847 = vmatprep.subr.mxu0 %v3775_v0  ;;  %918 = vmatprep.subr.mxu1 %v3776_v60  ;;  %v3787_v60 = vld [vmem:[#allocation28_spill] sm:$0xff] }
 0x20e   :  { %848 = vmatpush1.msra.mxu0 %v3777_v59  ;;  %919 = vmatpush1.msra.mxu1 %v3778_v58  ;;  %v3788_v58 = vld [vmem:[#allocation7_spill] sm:$0xff] }
 0x20f   :  { %849 = vmatprep.subr.mxu0 %v3779_v3  ;;  %920 = vmatprep.subr.mxu1 %v3780_v62  ;;  %v3789_v3 = vld [vmem:[#allocation8_spill] sm:$0xff] }
 0x210   :  { %850 = vmatpush1.msra.mxu0 %v3781_v6  ;;  %921 = vmatpush1.msra.mxu1 %v3782_v1  ;;  %v554_v62 = vld [vmem:[#allocation2 + $0x2] ss:$8 sm:$0xf] }
 0x211   :  { %851 = vmatprep.subr.mxu0 %v3783_v2  ;;  %922 = vmatprep.subr.mxu1 %v3784_v4  ;;  %v3790_v6 = vld [vmem:[#allocation29_spill] sm:$0xff]  ;;  %v3791_v2 = vld [vmem:[#allocation30_spill] sm:$0xff] }
 0x212   :  { %852 = vmatpush1.msra.mxu0 %v3785_v5  ;;  %885 = vmatprep.mubr.f32.mxu0 %v3786_v10  ;;  %v559_v59 = vrot.slane %v554_v62, %v3790_v6  ;;  %v563_v11 = vrot.slane %v554_v62, %v3791_v2  ;;  %v3792_v5 = vld [vmem:[#allocation31_spill] sm:$0xff] }
 0x213   :  { %923 = vmatpush1.msra.mxu1 %v3787_v60  ;;  %956 = vmatprep.mubr.f32.mxu1 %v3786_v10  ;;  %v567_v7 = vrot.slane %v554_v62, %v3792_v5 }
 0x214   :  { %1066 = vmatprep.subr.mxu0 %v3788_v58  ;;  %1137 = vmatprep.subr.mxu1 %v3789_v3  ;;  %v571_v58 = vrot.slane %v554_v62, %v2862_v9 }
 0x2b3   :  { %v642_v1 = vpop.f32.mrf.mxu0  ;;  %v713_v4 = vpop.f32.mrf.mxu1 }
 0x2b4   :  { %v643_v0 = vadd.f32 %v642_v1, %v559_v59  ;;  %v714_v60 = vadd.f32 %v713_v4, %v567_v7 }
 0x2b5   :  { %v644_v8 = vpop.f32.mrf.mxu0  ;;  %v715_v10 = vpop.f32.mrf.mxu1 }
 0x2b6   :  { %2481 = vtanh.f32 %v643_v0  ;;  %v645_v57 = vadd.f32 %v644_v8, %v563_v11  ;;  %v716_v3 = vadd.f32 %v715_v10, %v571_v58  ;;  %v3092_v58 = vld [vmem:[#allocation4 + $0x1e8] sm:$0xff] }
 0x2b7   :  { %3817 = vst [vmem:[#allocation7_spill] sm:$0xff] %v3092_v58 }
 0x2b8   :  { %2483 = vtanh.f32 %v645_v57 }
 0x2b9   :  { %2485 = vtanh.f32 %v714_v60 }
 0x2ba   :  { %2487 = vtanh.f32 %v716_v3  ;;  %v3098_v3 = vld [vmem:[#allocation4 + $0x1e0] sm:$0xff] }
 0x2c3   :  { %v2482_v56 = vpop.eup %2481 }
 0x2c4   :  { %v722_v63 = vmul.f32 0.5, %v2482_v56 }
 0x2c5   :  { %v2484_v6 = vpop.eup %2483 }
 0x2c6   :  { %v723_v55 = vadd.f32 0.5, %v722_v63  ;;  %v724_v59 = vmul.f32 0.5, %v2484_v6  ;;  %v2486_v2 = vpop.eup %2485 }
 0x2c7   :  { %v2488_v57 = vpop.eup %2487 }
 0x2c8   :  { %v725_v1 = vadd.f32 0.5, %v724_v59  ;;  %v729_v54 = vmul.f32 %v2486_v2, %v723_v55  ;;  %v726_v7 = vmul.f32 0.5, %v2488_v57  ;;  %v3100_v59 = vld [vmem:[#allocation4 + $0x1f0] sm:$0xff]  ;;  %v3110_v57 = vld [vmem:[#allocation4 + $0x1c0] sm:$0xff] }
 0x2ca   :  { %v728_v0 = vmul.f32 %v725_v1, %v2941_v61  ;;  %v727_v8 = vadd.f32 0.5, %v726_v7  ;;  %v3104_v1 = vld [vmem:[#allocation4 + $0x1c8] sm:$0xff]  ;;  %v3112_v7 = vld [vmem:[#allocation4 + $0x1d0] sm:$0xff] }
 0x2cc   :  { %v3015_v5 = vadd.f32 %v729_v54, %v728_v0  ;;  %v3106_v0 = vld [vmem:[#allocation4 + $0x1d8] sm:$0xff] }
 0x2ce   :  { %2489 = vtanh.f32 %v3015_v5 }
 0x2db   :  { %v2490_v11 = vpop.eup %2489 }
 0x2dc   :  { %v732_v60 = vmul.f32 %v2490_v11, %v727_v8  ;;  %v3116_v8 = vld [vmem:[#allocation4 + $0x1a8] sm:$0xff]  ;;  %v3118_v11 = vld [vmem:[#allocation4 + $0x1b8] sm:$0xff] }
 0x2de   :  { %733 = vst [vmem:[#allocation3 + $0x1] sm:$0x1] %v732_v60  ;;  %886 = vmatmul.mubr.f32.vlgmr.msra.gmra.mxu0 %v732_v60  ;;  %957 = vmatmul.mubr.f32.vlgmr.msra.gmra.mxu1 %v732_v60  ;;  %v3122_v60 = vld [vmem:[#allocation4 + $0x1a0] sm:$0xff] }
 0x2df   :  { %1067 = vmatpush1.msra.mxu0 %v2661_v12  ;;  %1138 = vmatpush1.msra.mxu1 %v2665_v13  ;;  %v3793_v12 = vld [vmem:[#allocation9_spill] sm:$0xff]  ;;  %v3794_v13 = vld [vmem:[#allocation10_spill] sm:$0xff] }
 0x2e0   :  { %1068 = vmatprep.subr.mxu0 %v2667_v14  ;;  %1139 = vmatprep.subr.mxu1 %v2669_v15  ;;  %v3795_v14 = vld [vmem:[#allocation11_spill] sm:$0xff]  ;;  %v3796_v15 = vld [vmem:[#allocation12_spill] sm:$0xff] }
 0x2e1   :  { %1069 = vmatpush1.msra.mxu0 %v2673_v16  ;;  %1140 = vmatpush1.msra.mxu1 %v2675_v17  ;;  %v3797_v16 = vld [vmem:[#allocation13_spill] sm:$0xff]  ;;  %v3798_v17 = vld [vmem:[#allocation14_spill] sm:$0xff] }
 0x2e2   :  { %1070 = vmatprep.subr.mxu0 %v2677_v18  ;;  %1141 = vmatprep.subr.mxu1 %v2681_v19  ;;  %v3799_v18 = vld [vmem:[#allocation15_spill] sm:$0xff]  ;;  %v3800_v19 = vld [vmem:[#allocation16_spill] sm:$0xff] }
 0x2e3   :  { %1071 = vmatpush1.msra.mxu0 %v2683_v20  ;;  %1142 = vmatpush1.msra.mxu1 %v2685_v21  ;;  %v3801_v20 = vld [vmem:[#allocation17_spill] sm:$0xff]  ;;  %v3802_v21 = vld [vmem:[#allocation18_spill] sm:$0xff] }
 0x2e4   :  { %1072 = vmatprep.subr.mxu0 %v2689_v22  ;;  %1143 = vmatprep.subr.mxu1 %v2691_v23  ;;  %v3803_v22 = vld [vmem:[#allocation19_spill] sm:$0xff]  ;;  %v3804_v23 = vld [vmem:[#allocation20_spill] sm:$0xff] }
 0x2e5   :  { %1073 = vmatpush1.msra.mxu0 %v2695_v24  ;;  %1144 = vmatpush1.msra.mxu1 %v2697_v25  ;;  %v3805_v24 = vld [vmem:[#allocation21_spill] sm:$0xff]  ;;  %v3806_v25 = vld [vmem:[#allocation22_spill] sm:$0xff] }
 0x2e6   :  { %1074 = vmatprep.subr.mxu0 %v2701_v26  ;;  %1145 = vmatprep.subr.mxu1 %v2703_v27  ;;  %v3807_v26 = vld [vmem:[#allocation23_spill] sm:$0xff]  ;;  %v3808_v27 = vld [vmem:[#allocation24_spill] sm:$0xff] }
 0x2e7   :  { %1075 = vmatpush1.msra.mxu0 %v2707_v28  ;;  %1146 = vmatpush1.msra.mxu1 %v2709_v29  ;;  %v3809_v28 = vld [vmem:[#allocation25_spill] sm:$0xff]  ;;  %v3810_v29 = vld [vmem:[#allocation26_spill] sm:$0xff] }
 0x2e8   :  { %1076 = vmatprep.subr.mxu0 %v2713_v30  ;;  %1147 = vmatprep.subr.mxu1 %v2715_v31  ;;  %v3811_v30 = vld [vmem:[#allocation27_spill] sm:$0xff]  ;;  %v3812_v31 = vmov 0.0  }
 0x2e9   :  { %1077 = vmatpush1.msra.mxu0 %v2719_v32  ;;  %1148 = vmatpush1.msra.mxu1 %v2721_v33  ;;  %v3813_v32 = vld [vmem:[#allocation28_spill] sm:$0xff] }
 0x2ea   :  { %1078 = vmatprep.subr.mxu0 %v2725_v34  ;;  %1149 = vmatprep.subr.mxu1 %v2727_v35  ;;  %v799_v33 = vld [vmem:[#allocation2 + $0x3] ss:$8 sm:$0xf] }
 0x2eb   :  { %1079 = vmatpush1.msra.mxu0 %v2731_v36  ;;  %1150 = vmatpush1.msra.mxu1 %v2733_v37  ;;  %v3814_v34 = vld [vmem:[#allocation29_spill] sm:$0xff] }
 0x2ec   :  { %1080 = vmatprep.subr.mxu0 %v2737_v38  ;;  %1151 = vmatprep.subr.mxu1 %v2739_v39  ;;  %v804_v35 = vrot.slane %v799_v33, %v3814_v34  ;;  %v3815_v38 = vld [vmem:[#allocation30_spill] sm:$0xff] }
 0x2ed   :  { %1081 = vmatpush1.msra.mxu0 %v2743_v40  ;;  %1152 = vmatpush1.msra.mxu1 %v2745_v41  ;;  %v808_v39 = vrot.slane %v799_v33, %v3815_v38 }
 0x2ee   :  { %1082 = vmatprep.subr.mxu0 %v2749_v42  ;;  %1153 = vmatprep.subr.mxu1 %v2751_v43  ;;  %v3816_v42 = vld [vmem:[#allocation31_spill] sm:$0xff] }
 0x2ef   :  { %1083 = vmatpush1.msra.mxu0 %v2755_v44  ;;  %1154 = vmatpush1.msra.mxu1 %v2757_v45  ;;  %v812_v43 = vrot.slane %v799_v33, %v3816_v42 }
 0x2f0   :  { %1084 = vmatprep.subr.mxu0 %v2761_v46  ;;  %1155 = vmatprep.subr.mxu1 %v2763_v47  ;;  %v816_v47 = vrot.slane %v799_v33, %v2862_v9  ;;  %v3184_v33 = vld [vmem:[#allocation4 + $0x110] sm:$0xff] }
 0x2f1   :  { %1085 = vmatpush1.msra.mxu0 %v2767_v48  ;;  %1156 = vmatpush1.msra.mxu1 %v2769_v49 }
 0x2f2   :  { %1086 = vmatprep.subr.mxu0 %v2773_v50  ;;  %1157 = vmatprep.subr.mxu1 %v2775_v51 }
 0x2f3   :  { %1087 = vmatpush1.msra.mxu0 %v2779_v52  ;;  %1158 = vmatpush1.msra.mxu1 %v2781_v53 }
 0x2f4   :  { %1088 = vmatprep.subr.mxu0 %v3793_v12  ;;  %1159 = vmatprep.subr.mxu1 %v3794_v13  ;;  %v3124_v12 = vld [vmem:[#allocation4 + $0x1b0] sm:$0xff]  ;;  %v3128_v13 = vld [vmem:[#allocation4 + $0x188] sm:$0xff] }
 0x2f5   :  { %1089 = vmatpush1.msra.mxu0 %v3795_v14  ;;  %1160 = vmatpush1.msra.mxu1 %v3796_v15  ;;  %v3130_v14 = vld [vmem:[#allocation4 + $0x198] sm:$0xff]  ;;  %v3134_v15 = vld [vmem:[#allocation4 + $0x180] sm:$0xff] }
 0x2f6   :  { %1090 = vmatprep.subr.mxu0 %v3797_v16  ;;  %1161 = vmatprep.subr.mxu1 %v3798_v17  ;;  %v3136_v16 = vld [vmem:[#allocation4 + $0x190] sm:$0xff]  ;;  %v3140_v17 = vld [vmem:[#allocation4 + $0x168] sm:$0xff] }
 0x2f7   :  { %1091 = vmatpush1.msra.mxu0 %v3799_v18  ;;  %1162 = vmatpush1.msra.mxu1 %v3800_v19  ;;  %v3142_v18 = vld [vmem:[#allocation4 + $0x178] sm:$0xff]  ;;  %v3146_v19 = vld [vmem:[#allocation4 + $0x160] sm:$0xff] }
 0x2f8   :  { %1092 = vmatprep.subr.mxu0 %v3801_v20  ;;  %1163 = vmatprep.subr.mxu1 %v3802_v21  ;;  %v3148_v20 = vld [vmem:[#allocation4 + $0x170] sm:$0xff]  ;;  %v3152_v21 = vld [vmem:[#allocation4 + $0x148] sm:$0xff] }
 0x2f9   :  { %1093 = vmatpush1.msra.mxu0 %v3803_v22  ;;  %1164 = vmatpush1.msra.mxu1 %v3804_v23  ;;  %v3154_v22 = vld [vmem:[#allocation4 + $0x158] sm:$0xff]  ;;  %v3158_v23 = vld [vmem:[#allocation4 + $0x140] sm:$0xff] }
 0x2fa   :  { %1094 = vmatprep.subr.mxu0 %v3805_v24  ;;  %1165 = vmatprep.subr.mxu1 %v3806_v25  ;;  %v3160_v24 = vld [vmem:[#allocation4 + $0x150] sm:$0xff]  ;;  %v3164_v25 = vld [vmem:[#allocation4 + $0x128] sm:$0xff] }
 0x2fb   :  { %1095 = vmatpush1.msra.mxu0 %v3807_v26  ;;  %1166 = vmatpush1.msra.mxu1 %v3808_v27  ;;  %v3166_v26 = vld [vmem:[#allocation4 + $0x138] sm:$0xff]  ;;  %v3170_v27 = vld [vmem:[#allocation4 + $0x120] sm:$0xff] }
 0x2fc   :  { %1096 = vmatprep.subr.mxu0 %v3809_v28  ;;  %1167 = vmatprep.subr.mxu1 %v3810_v29  ;;  %v3172_v28 = vld [vmem:[#allocation4 + $0x130] sm:$0xff]  ;;  %v3176_v29 = vld [vmem:[#allocation4 + $0x108] sm:$0xff] }
 0x2fd   :  { %1097 = vmatpush1.msra.mxu0 %v3811_v30  ;;  %1130 = vmatprep.mubr.f32.mxu0 %v3812_v31  ;;  %v3178_v30 = vld [vmem:[#allocation4 + $0x118] sm:$0xff] }
 0x2fe   :  { %1168 = vmatpush1.msra.mxu1 %v3813_v32  ;;  %1201 = vmatprep.mubr.f32.mxu1 %v3812_v31  ;;  %v3182_v32 = vld [vmem:[#allocation4 + $0x100] sm:$0xff] }
 0x2ff   :  { %1311 = vmatprep.subr.mxu0 %v3092_v58 }
 0x39e   :  { %v887_v36 = vpop.f32.mrf.mxu0  ;;  %v958_v40 = vpop.f32.mrf.mxu1 }
 0x39f   :  { %v888_v37 = vadd.f32 %v887_v36, %v804_v35  ;;  %v959_v45 = vadd.f32 %v958_v40, %v812_v43  ;;  %v3188_v35 = vld [vmem:[#allocation4 + $0xe8] sm:$0xff]  ;;  %v3190_v36 = vld [vmem:[#allocation4 + $0xf8] sm:$0xff]  ;;  %v3206_v43 = vld [vmem:[#allocation4 + $0xc0] sm:$0xff] }
 0x3a0   :  { %v889_v41 = vpop.f32.mrf.mxu0  ;;  %v960_v46 = vpop.f32.mrf.mxu1  ;;  %v3200_v40 = vld [vmem:[#allocation4 + $0xc8] sm:$0xff] }
 0x3a1   :  { %2491 = vtanh.f32 %v888_v37  ;;  %v890_v44 = vadd.f32 %v889_v41, %v808_v39  ;;  %v961_v48 = vadd.f32 %v960_v46, %v816_v47  ;;  %v3194_v37 = vld [vmem:[#allocation4 + $0xe0] sm:$0xff]  ;;  %v3196_v39 = vld [vmem:[#allocation4 + $0xf0] sm:$0xff]  ;;  %v3202_v41 = vld [vmem:[#allocation4 + $0xd8] sm:$0xff] }
 0x3a2   :  { %v3214_v46 = vld [vmem:[#allocation4 + $0xb8] sm:$0xff]  ;;  %v3218_v47 = vld [vmem:[#allocation4 + $0xa0] sm:$0xff] }
 0x3a3   :  { %2493 = vtanh.f32 %v890_v44  ;;  %v3208_v44 = vld [vmem:[#allocation4 + $0xd0] sm:$0xff] }
 0x3a4   :  { %2495 = vtanh.f32 %v959_v45  ;;  %v3212_v45 = vld [vmem:[#allocation4 + $0xa8] sm:$0xff] }
 0x3a5   :  { %2497 = vtanh.f32 %v961_v48  ;;  %v3220_v48 = vld [vmem:[#allocation4 + $0xb0] sm:$0xff] }
 0x3ae   :  { %v2492_v49 = vpop.eup %2491 }
 0x3af   :  { %v967_v50 = vmul.f32 0.5, %v2492_v49  ;;  %v3224_v49 = vld [vmem:[#allocation4 + $0x88] sm:$0xff] }
 0x3b0   :  { %v2494_v51 = vpop.eup %2493  ;;  %3819 = vst [vmem:[#allocation9_spill] sm:$0xff] %v3224_v49 }
 0x3b1   :  { %v968_v52 = vadd.f32 0.5, %v967_v50  ;;  %v969_v53 = vmul.f32 0.5, %v2494_v51  ;;  %v2496_v54 = vpop.eup %2495  ;;  %v3226_v50 = vld [vmem:[#allocation4 + $0x98] sm:$0xff]  ;;  %v3230_v51 = vld [vmem:[#allocation4 + $0x80] sm:$0xff] }
 0x3b2   :  { %v2498_v62 = vpop.eup %2497  ;;  %3820 = vst [vmem:[#allocation10_spill] sm:$0xff] %v3226_v50  ;;  %3821 = vst [vmem:[#allocation11_spill] sm:$0xff] %v3230_v51 }
 0x3b3   :  { %v970_v61 = vadd.f32 0.5, %v969_v53  ;;  %v974_v63 = vmul.f32 %v2496_v54, %v968_v52  ;;  %v971_v6 = vmul.f32 0.5, %v2498_v62  ;;  %v3232_v52 = vld [vmem:[#allocation4 + $0x90] sm:$0xff]  ;;  %v3236_v53 = vld [vmem:[#allocation4 + $0x68] sm:$0xff]  ;;  %v3242_v54 = vld [vmem:[#allocation4 + $0x60] sm:$0xff] }
 0x3b4   :  { %3822 = vst [vmem:[#allocation12_spill] sm:$0xff] %v3232_v52  ;;  %3823 = vst [vmem:[#allocation13_spill] sm:$0xff] %v3236_v53  ;;  %v3250_v62 = vld [vmem:[#allocation4 + $0x58] sm:$0xff] }
 0x3b5   :  { %v973_v55 = vmul.f32 %v970_v61, %v3015_v5  ;;  %v972_v2 = vadd.f32 0.5, %v971_v6  ;;  %v3094_v5 = vld [vmem:[#allocation4 + $0x1f8] sm:$0xff]  ;;  %3825 = vst [vmem:[#allocation15_spill] sm:$0xff] %v3242_v54  ;;  %3828 = vst [vmem:[#allocation18_spill] sm:$0xff] %v3250_v62  ;;  %v3254_v6 = vld [vmem:[#allocation4 + $0x40] sm:$0xff] }
 0x3b6   :  { %3818 = vst [vmem:[#allocation8_spill] sm:$0xff] %v3094_v5  ;;  %1382 = vmatprep.subr.mxu1 %v3094_v5  ;;  %v3238_v61 = vld [vmem:[#allocation4 + $0x78] sm:$0xff]  ;;  %3829 = vst [vmem:[#allocation19_spill] sm:$0xff] %v3254_v6 }
 0x3b7   :  { %v3087_v56 = vadd.f32 %v974_v63, %v973_v55  ;;  %3824 = vst [vmem:[#allocation14_spill] sm:$0xff] %v3238_v61  ;;  %v3244_v55 = vld [vmem:[#allocation4 + $0x70] sm:$0xff]  ;;  %v3248_v63 = vld [vmem:[#allocation4 + $0x48] sm:$0xff] }
 0x3b8   :  { %3826 = vst [vmem:[#allocation16_spill] sm:$0xff] %v3244_v55  ;;  %3827 = vst [vmem:[#allocation17_spill] sm:$0xff] %v3248_v63 }
 0x3b9   :  { %2499 = vtanh.f32 %v3087_v56 }
 0x3c6   :  { %v2500_v4 = vpop.eup %2499 }
 0x3c7   :  { %v977_v10 = vmul.f32 %v2500_v4, %v972_v2  ;;  %v3256_v2 = vld [vmem:[#allocation4 + $0x50] sm:$0xff]  ;;  %v3260_v4 = vld [vmem:[#allocation4 + $0x28] sm:$0xff] }
 0x3c8   :  { %3830 = vst [vmem:[#allocation20_spill] sm:$0xff] %v3256_v2  ;;  %3831 = vst [vmem:[#allocation21_spill] sm:$0xff] %v3260_v4 }
 0x3c9   :  { %978 = vst [vmem:[#allocation3 + $0x2] sm:$0x1] %v977_v10  ;;  %1131 = vmatmul.mubr.f32.vlgmr.msra.gmra.mxu0 %v977_v10  ;;  %1202 = vmatmul.mubr.f32.vlgmr.msra.gmra.mxu1 %v977_v10  ;;  %v3262_v10 = vld [vmem:[#allocation4 + $0x38] sm:$0xff] }
 0x3ca   :  { %1375 = vmatprep.mubr.f32.mxu0 %v3812_v31  ;;  %1446 = vmatprep.mubr.f32.mxu1 %v3812_v31  ;;  %3832 = vst [vmem:[#allocation22_spill] sm:$0xff] %v3262_v10  ;;  %v3266_v31 = vld [vmem:[#allocation4 + $0x20] sm:$0xff] }
 0x3cb   :  { %1312 = vmatpush1.msra.mxu0 %v3098_v3  ;;  %1383 = vmatpush1.msra.mxu1 %v3100_v59  ;;  %3833 = vst [vmem:[#allocation23_spill] sm:$0xff] %v3266_v31 }
 0x3cc   :  { %1313 = vmatprep.subr.mxu0 %v3104_v1  ;;  %1384 = vmatprep.subr.mxu1 %v3106_v0 }
 0x3cd   :  { %1314 = vmatpush1.msra.mxu0 %v3110_v57  ;;  %1385 = vmatpush1.msra.mxu1 %v3112_v7 }
 0x3ce   :  { %1315 = vmatprep.subr.mxu0 %v3116_v8  ;;  %1386 = vmatprep.subr.mxu1 %v3118_v11 }
 0x3cf   :  { %1316 = vmatpush1.msra.mxu0 %v3122_v60  ;;  %1387 = vmatpush1.msra.mxu1 %v3124_v12 }
 0x3d0   :  { %1317 = vmatprep.subr.mxu0 %v3128_v13  ;;  %1388 = vmatprep.subr.mxu1 %v3130_v14 }
 0x3d1   :  { %1318 = vmatpush1.msra.mxu0 %v3134_v15  ;;  %1389 = vmatpush1.msra.mxu1 %v3136_v16 }
 0x3d2   :  { %1319 = vmatprep.subr.mxu0 %v3140_v17  ;;  %1390 = vmatprep.subr.mxu1 %v3142_v18 }
 0x3d3   :  { %1320 = vmatpush1.msra.mxu0 %v3146_v19  ;;  %1391 = vmatpush1.msra.mxu1 %v3148_v20 }
 0x3d4   :  { %1321 = vmatprep.subr.mxu0 %v3152_v21  ;;  %1392 = vmatprep.subr.mxu1 %v3154_v22 }
 0x3d5   :  { %1322 = vmatpush1.msra.mxu0 %v3158_v23  ;;  %1393 = vmatpush1.msra.mxu1 %v3160_v24 }
 0x3d6   :  { %1323 = vmatprep.subr.mxu0 %v3164_v25  ;;  %1394 = vmatprep.subr.mxu1 %v3166_v26 }
 0x3d7   :  { %1324 = vmatpush1.msra.mxu0 %v3170_v27  ;;  %1395 = vmatpush1.msra.mxu1 %v3172_v28 }
 0x3d8   :  { %1325 = vmatprep.subr.mxu0 %v3176_v29  ;;  %1396 = vmatprep.subr.mxu1 %v3178_v30 }
 0x3d9   :  { %1326 = vmatpush1.msra.mxu0 %v3182_v32  ;;  %1397 = vmatpush1.msra.mxu1 %v3184_v33 }
 0x3da   :  { %1327 = vmatprep.subr.mxu0 %v3188_v35  ;;  %1398 = vmatprep.subr.mxu1 %v3190_v36 }
 0x3db   :  { %1328 = vmatpush1.msra.mxu0 %v3194_v37  ;;  %1399 = vmatpush1.msra.mxu1 %v3196_v39 }
 0x3dc   :  { %1329 = vmatprep.subr.mxu0 %v3200_v40  ;;  %1400 = vmatprep.subr.mxu1 %v3202_v41 }
 0x3dd   :  { %1330 = vmatpush1.msra.mxu0 %v3206_v43  ;;  %1401 = vmatpush1.msra.mxu1 %v3208_v44 }
 0x3de   :  { %1331 = vmatprep.subr.mxu0 %v3212_v45  ;;  %1402 = vmatprep.subr.mxu1 %v3214_v46 }
 0x3df   :  { %1332 = vmatpush1.msra.mxu0 %v3218_v47  ;;  %1403 = vmatpush1.msra.mxu1 %v3220_v48 }
 0x3e0   :  { %1333 = vmatprep.subr.mxu0 %v3224_v49  ;;  %1404 = vmatprep.subr.mxu1 %v3226_v50 }
 0x3e1   :  { %1334 = vmatpush1.msra.mxu0 %v3230_v51  ;;  %1405 = vmatpush1.msra.mxu1 %v3232_v52 }
 0x3e2   :  { %1335 = vmatprep.subr.mxu0 %v3236_v53  ;;  %1406 = vmatprep.subr.mxu1 %v3238_v61 }
 0x3e3   :  { %1336 = vmatpush1.msra.mxu0 %v3242_v54  ;;  %1407 = vmatpush1.msra.mxu1 %v3244_v55  ;;  %v3278_v55 = vld [vmem:[#allocation4 + $0x10] sm:$0xff] }
 0x3e4   :  { %1337 = vmatprep.subr.mxu0 %v3248_v63  ;;  %1408 = vmatprep.subr.mxu1 %v3250_v62  ;;  %v3268_v63 = vld [vmem:[#allocation4 + $0x30] sm:$0xff]  ;;  %v3270_v62 = vld [vmem:[#allocation4 + $0x8] sm:$0xff]  ;;  %3838 = vst [vmem:[#allocation28_spill] sm:$0xff] %v3278_v55 }
 0x3e5   :  { %1338 = vmatpush1.msra.mxu0 %v3254_v6  ;;  %1409 = vmatpush1.msra.mxu1 %v3256_v2  ;;  %3834 = vst [vmem:[#allocation24_spill] sm:$0xff] %v3268_v63  ;;  %3835 = vst [vmem:[#allocation25_spill] sm:$0xff] %v3270_v62  ;;  %v3274_v6 = vld [vmem:[#allocation4 + $0x18] sm:$0xff]  ;;  %v3276_v2 = vld [vmem:[#allocation4] sm:$0xff] }
 0x3e6   :  { %1339 = vmatprep.subr.mxu0 %v3260_v4  ;;  %1410 = vmatprep.subr.mxu1 %v3262_v10  ;;  %3836 = vst [vmem:[#allocation26_spill] sm:$0xff] %v3274_v6  ;;  %3837 = vst [vmem:[#allocation27_spill] sm:$0xff] %v3276_v2 }
 0x3e7   :  { %1340 = vmatpush1.msra.mxu0 %v3266_v31  ;;  %1411 = vmatpush1.msra.mxu1 %v3268_v63  ;;  %v1044_v31 = vld [vmem:[#allocation2 + $0x4] ss:$8 sm:$0xf] }
 0x3e8   :  { %1341 = vmatprep.subr.mxu0 %v3270_v62  ;;  %1412 = vmatprep.subr.mxu1 %v3274_v6  ;;  %v1049_v63 = vrot.slane %v1044_v31, %v3814_v34  ;;  %v1053_v54 = vrot.slane %v1044_v31, %v3815_v38  ;;  %v1057_v6 = vrot.slane %v1044_v31, %v3816_v42 }
 0x3e9   :  { %1342 = vmatpush1.msra.mxu0 %v3276_v2  ;;  %1413 = vmatpush1.msra.mxu1 %v3278_v55 }
 0x3ea   :  { %1556 = vmatprep.subr.mxu0 %v3092_v58  ;;  %1627 = vmatprep.subr.mxu1 %v3094_v5  ;;  %v1061_v58 = vrot.slane %v1044_v31, %v2862_v9 }
 0x489   :  { %v1132_v10 = vpop.f32.mrf.mxu0  ;;  %v1203_v61 = vpop.f32.mrf.mxu1 }
 0x48a   :  { %v1133_v4 = vadd.f32 %v1132_v10, %v1049_v63  ;;  %v1204_v2 = vadd.f32 %v1203_v61, %v1057_v6  ;;  %v3849_v6 = vld [vmem:[#allocation19_spill] sm:$0xff] }
 0x48b   :  { %v1134_v53 = vpop.f32.mrf.mxu0  ;;  %v1205_v55 = vpop.f32.mrf.mxu1 }
 0x48c   :  { %2501 = vtanh.f32 %v1133_v4  ;;  %v1135_v62 = vadd.f32 %v1134_v53, %v1053_v54  ;;  %v1206_v5 = vadd.f32 %v1205_v55, %v1061_v58  ;;  %v3847_v55 = vld [vmem:[#allocation17_spill] sm:$0xff] }
 0x48e   :  { %2503 = vtanh.f32 %v1135_v62  ;;  %v3848_v62 = vld [vmem:[#allocation18_spill] sm:$0xff] }
 0x48f   :  { %2505 = vtanh.f32 %v1204_v2  ;;  %v3850_v2 = vld [vmem:[#allocation20_spill] sm:$0xff] }
 0x490   :  { %2507 = vtanh.f32 %v1206_v5  ;;  %v3842_v5 = vld [vmem:[#allocation12_spill] sm:$0xff] }
 0x499   :  { %v2502_v52 = vpop.eup %2501 }
 0x49a   :  { %v1212_v51 = vmul.f32 0.5, %v2502_v52  ;;  %v3846_v52 = vld [vmem:[#allocation16_spill] sm:$0xff] }
 0x49b   :  { %v2504_v34 = vpop.eup %2503 }
 0x49c   :  { %v1213_v50 = vadd.f32 0.5, %v1212_v51  ;;  %v1214_v63 = vmul.f32 0.5, %v2504_v34  ;;  %v2506_v38 = vpop.eup %2505  ;;  %v3839_v34 = vld [vmem:[#allocation9_spill] sm:$0xff]  ;;  %v3845_v51 = vld [vmem:[#allocation15_spill] sm:$0xff] }
 0x49d   :  { %v2508_v53 = vpop.eup %2507 }
 0x49e   :  { %v1215_v10 = vadd.f32 0.5, %v1214_v63  ;;  %v1219_v49 = vmul.f32 %v2506_v38, %v1213_v50  ;;  %v1216_v61 = vmul.f32 0.5, %v2508_v53  ;;  %v3840_v38 = vld [vmem:[#allocation10_spill] sm:$0xff]  ;;  %v3851_v63 = vld [vmem:[#allocation21_spill] sm:$0xff]  ;;  %v3854_v53 = vld [vmem:[#allocation24_spill] sm:$0xff] }
 0x49f   :  { %v3844_v50 = vld [vmem:[#allocation14_spill] sm:$0xff] }
 0x4a0   :  { %v1218_v4 = vmul.f32 %v1215_v10, %v3087_v56  ;;  %v1217_v54 = vadd.f32 0.5, %v1216_v61  ;;  %v3841_v56 = vld [vmem:[#allocation11_spill] sm:$0xff]  ;;  %v3852_v10 = vld [vmem:[#allocation22_spill] sm:$0xff]  ;;  %v3855_v61 = vld [vmem:[#allocation25_spill] sm:$0xff] }
 0x4a2   :  { %v3291_v42 = vadd.f32 %v1219_v49, %v1218_v4  ;;  %v3843_v49 = vld [vmem:[#allocation13_spill] sm:$0xff]  ;;  %v3853_v4 = vld [vmem:[#allocation23_spill] sm:$0xff] }
 0x4a4   :  { %2509 = vtanh.f32 %v3291_v42 }
 0x4b1   :  { %v2510_v31 = vpop.eup %2509 }
 0x4b2   :  { %v1222_v58 = vmul.f32 %v2510_v31, %v1217_v54  ;;  %v3856_v54 = vld [vmem:[#allocation26_spill] sm:$0xff]  ;;  %v3857_v31 = vld [vmem:[#allocation27_spill] sm:$0xff] }
 0x4b4   :  { %1223 = vst [vmem:[#allocation3 + $0x3] sm:$0x1] %v1222_v58  ;;  %1376 = vmatmul.mubr.f32.vlgmr.msra.gmra.mxu0 %v1222_v58  ;;  %1447 = vmatmul.mubr.f32.vlgmr.msra.gmra.mxu1 %v1222_v58  ;;  %v3858_v58 = vmov 0.0  }
 0x4b5   :  { %1557 = vmatpush1.msra.mxu0 %v3098_v3  ;;  %1628 = vmatpush1.msra.mxu1 %v3100_v59 }
 0x4b6   :  { %1558 = vmatprep.subr.mxu0 %v3104_v1  ;;  %1629 = vmatprep.subr.mxu1 %v3106_v0 }
 0x4b7   :  { %1559 = vmatpush1.msra.mxu0 %v3110_v57  ;;  %1630 = vmatpush1.msra.mxu1 %v3112_v7 }
 0x4b8   :  { %1560 = vmatprep.subr.mxu0 %v3116_v8  ;;  %1631 = vmatprep.subr.mxu1 %v3118_v11 }
 0x4b9   :  { %1561 = vmatpush1.msra.mxu0 %v3122_v60  ;;  %1632 = vmatpush1.msra.mxu1 %v3124_v12 }
 0x4ba   :  { %1562 = vmatprep.subr.mxu0 %v3128_v13  ;;  %1633 = vmatprep.subr.mxu1 %v3130_v14 }
 0x4bb   :  { %1563 = vmatpush1.msra.mxu0 %v3134_v15  ;;  %1634 = vmatpush1.msra.mxu1 %v3136_v16 }
 0x4bc   :  { %1564 = vmatprep.subr.mxu0 %v3140_v17  ;;  %1635 = vmatprep.subr.mxu1 %v3142_v18 }
 0x4bd   :  { %1565 = vmatpush1.msra.mxu0 %v3146_v19  ;;  %1636 = vmatpush1.msra.mxu1 %v3148_v20 }
 0x4be   :  { %1566 = vmatprep.subr.mxu0 %v3152_v21  ;;  %1637 = vmatprep.subr.mxu1 %v3154_v22 }
 0x4bf   :  { %1567 = vmatpush1.msra.mxu0 %v3158_v23  ;;  %1638 = vmatpush1.msra.mxu1 %v3160_v24 }
 0x4c0   :  { %1568 = vmatprep.subr.mxu0 %v3164_v25  ;;  %1639 = vmatprep.subr.mxu1 %v3166_v26 }
 0x4c1   :  { %1569 = vmatpush1.msra.mxu0 %v3170_v27  ;;  %1640 = vmatpush1.msra.mxu1 %v3172_v28 }
 0x4c2   :  { %1570 = vmatprep.subr.mxu0 %v3176_v29  ;;  %1641 = vmatprep.subr.mxu1 %v3178_v30 }
 0x4c3   :  { %1571 = vmatpush1.msra.mxu0 %v3182_v32  ;;  %1642 = vmatpush1.msra.mxu1 %v3184_v33 }
 0x4c4   :  { %1572 = vmatprep.subr.mxu0 %v3188_v35  ;;  %1643 = vmatprep.subr.mxu1 %v3190_v36 }
 0x4c5   :  { %1573 = vmatpush1.msra.mxu0 %v3194_v37  ;;  %1644 = vmatpush1.msra.mxu1 %v3196_v39 }
 0x4c6   :  { %1574 = vmatprep.subr.mxu0 %v3200_v40  ;;  %1645 = vmatprep.subr.mxu1 %v3202_v41 }
 0x4c7   :  { %1575 = vmatpush1.msra.mxu0 %v3206_v43  ;;  %1646 = vmatpush1.msra.mxu1 %v3208_v44 }
 0x4c8   :  { %1576 = vmatprep.subr.mxu0 %v3212_v45  ;;  %1647 = vmatprep.subr.mxu1 %v3214_v46 }
 0x4c9   :  { %1577 = vmatpush1.msra.mxu0 %v3218_v47  ;;  %1648 = vmatpush1.msra.mxu1 %v3220_v48 }
 0x4ca   :  { %1578 = vmatprep.subr.mxu0 %v3839_v34  ;;  %1649 = vmatprep.subr.mxu1 %v3840_v38 }
 0x4cb   :  { %1579 = vmatpush1.msra.mxu0 %v3841_v56  ;;  %1650 = vmatpush1.msra.mxu1 %v3842_v5 }
 0x4cc   :  { %1580 = vmatprep.subr.mxu0 %v3843_v49  ;;  %1651 = vmatprep.subr.mxu1 %v3844_v50 }
 0x4cd   :  { %1581 = vmatpush1.msra.mxu0 %v3845_v51  ;;  %1652 = vmatpush1.msra.mxu1 %v3846_v52 }
 0x4ce   :  { %1582 = vmatprep.subr.mxu0 %v3847_v55  ;;  %1653 = vmatprep.subr.mxu1 %v3848_v62  ;;  %v3859_v62 = vld [vmem:[#allocation28_spill] sm:$0xff] }
 0x4cf   :  { %1583 = vmatpush1.msra.mxu0 %v3849_v6  ;;  %1654 = vmatpush1.msra.mxu1 %v3850_v2  ;;  %v3860_v2 = vld [vmem:[#allocation7_spill] sm:$0xff] }
 0x4d0   :  { %1584 = vmatprep.subr.mxu0 %v3851_v63  ;;  %1655 = vmatprep.subr.mxu1 %v3852_v10  ;;  %v3861_v63 = vld [vmem:[#allocation8_spill] sm:$0xff] }
 0x4d1   :  { %1585 = vmatpush1.msra.mxu0 %v3853_v4  ;;  %1656 = vmatpush1.msra.mxu1 %v3854_v53  ;;  %v1289_v10 = vld [vmem:[#allocation2 + $0x5] ss:$8 sm:$0xf] }
 0x4d2   :  { %1586 = vmatprep.subr.mxu0 %v3855_v61  ;;  %1657 = vmatprep.subr.mxu1 %v3856_v54  ;;  %v3862_v4 = vld [vmem:[#allocation29_spill] sm:$0xff]  ;;  %v3863_v61 = vld [vmem:[#allocation30_spill] sm:$0xff] }
 0x4d3   :  { %1587 = vmatpush1.msra.mxu0 %v3857_v31  ;;  %1620 = vmatprep.mubr.f32.mxu0 %v3858_v58  ;;  %v1294_v6 = vrot.slane %v1289_v10, %v3862_v4  ;;  %v1298_v52 = vrot.slane %v1289_v10, %v3863_v61  ;;  %v3864_v31 = vld [vmem:[#allocation31_spill] sm:$0xff] }
 0x4d4   :  { %1658 = vmatpush1.msra.mxu1 %v3859_v62  ;;  %1691 = vmatprep.mubr.f32.mxu1 %v3858_v58  ;;  %v1302_v50 = vrot.slane %v1289_v10, %v3864_v31 }
 0x4d5   :  { %1801 = vmatprep.subr.mxu0 %v3860_v2  ;;  %1872 = vmatprep.subr.mxu1 %v3861_v63  ;;  %v1306_v2 = vrot.slane %v1289_v10, %v2862_v9  ;;  %v3872_v10 = vld [vmem:[#allocation16_spill] sm:$0xff] }
 0x574   :  { %v1377_v53 = vpop.f32.mrf.mxu0  ;;  %v1448_v54 = vpop.f32.mrf.mxu1 }
 0x575   :  { %v1378_v55 = vadd.f32 %v1377_v53, %v1294_v6  ;;  %v1449_v62 = vadd.f32 %v1448_v54, %v1302_v50  ;;  %v3875_v54 = vld [vmem:[#allocation19_spill] sm:$0xff] }
 0x576   :  { %v1379_v51 = vpop.f32.mrf.mxu0  ;;  %v1450_v58 = vpop.f32.mrf.mxu1 }
 0x577   :  { %2511 = vtanh.f32 %v1378_v55  ;;  %v1380_v49 = vadd.f32 %v1379_v51, %v1298_v52  ;;  %v1451_v63 = vadd.f32 %v1450_v58, %v1306_v2  ;;  %v3870_v2 = vld [vmem:[#allocation14_spill] sm:$0xff]  ;;  %v3876_v58 = vld [vmem:[#allocation20_spill] sm:$0xff] }
 0x579   :  { %2513 = vtanh.f32 %v1380_v49 }
 0x57a   :  { %2515 = vtanh.f32 %v1449_v62 }
 0x57b   :  { %2517 = vtanh.f32 %v1451_v63  ;;  %v3871_v63 = vld [vmem:[#allocation15_spill] sm:$0xff] }
 0x584   :  { %v2512_v5 = vpop.eup %2511 }
 0x585   :  { %v1457_v56 = vmul.f32 0.5, %v2512_v5  ;;  %v3869_v5 = vld [vmem:[#allocation13_spill] sm:$0xff] }
 0x586   :  { %v2514_v4 = vpop.eup %2513 }
 0x587   :  { %v1458_v38 = vadd.f32 0.5, %v1457_v56  ;;  %v1459_v6 = vmul.f32 0.5, %v2514_v4  ;;  %v2516_v61 = vpop.eup %2515  ;;  %v3868_v56 = vld [vmem:[#allocation12_spill] sm:$0xff]  ;;  %v3873_v4 = vld [vmem:[#allocation17_spill] sm:$0xff] }
 0x588   :  { %v2518_v49 = vpop.eup %2517 }
 0x589   :  { %v1460_v53 = vadd.f32 0.5, %v1459_v6  ;;  %v1464_v34 = vmul.f32 %v2516_v61, %v1458_v38  ;;  %v1461_v50 = vmul.f32 0.5, %v2518_v49  ;;  %v3867_v38 = vld [vmem:[#allocation11_spill] sm:$0xff]  ;;  %v3874_v61 = vld [vmem:[#allocation18_spill] sm:$0xff]  ;;  %v3877_v6 = vld [vmem:[#allocation21_spill] sm:$0xff] }
 0x58a   :  { %v3880_v49 = vld [vmem:[#allocation24_spill] sm:$0xff] }
 0x58b   :  { %v1463_v55 = vmul.f32 %v1460_v53, %v3291_v42  ;;  %v1462_v51 = vadd.f32 0.5, %v1461_v50  ;;  %v3865_v42 = vld [vmem:[#allocation9_spill] sm:$0xff]  ;;  %v3878_v53 = vld [vmem:[#allocation22_spill] sm:$0xff] }
 0x58c   :  { %v3881_v50 = vld [vmem:[#allocation25_spill] sm:$0xff] }
 0x58d   :  { %v3365_v31 = vadd.f32 %v1464_v34, %v1463_v55  ;;  %v3866_v34 = vld [vmem:[#allocation10_spill] sm:$0xff]  ;;  %v3879_v55 = vld [vmem:[#allocation23_spill] sm:$0xff] }
 0x58f   :  { %2519 = vtanh.f32 %v3365_v31 }
 0x59c   :  { %v2520_v52 = vpop.eup %2519 }
 0x59d   :  { %v1467_v62 = vmul.f32 %v2520_v52, %v1462_v51  ;;  %v3882_v51 = vld [vmem:[#allocation26_spill] sm:$0xff]  ;;  %v3883_v52 = vld [vmem:[#allocation27_spill] sm:$0xff] }
 0x59f   :  { %1468 = vst [vmem:[#allocation3 + $0x4] sm:$0x1] %v1467_v62  ;;  %1621 = vmatmul.mubr.f32.vlgmr.msra.gmra.mxu0 %v1467_v62  ;;  %1692 = vmatmul.mubr.f32.vlgmr.msra.gmra.mxu1 %v1467_v62  ;;  %v3884_v62 = vmov 0.0  }
 0x5a0   :  { %1802 = vmatpush1.msra.mxu0 %v3098_v3  ;;  %1873 = vmatpush1.msra.mxu1 %v3100_v59 }
 0x5a1   :  { %1803 = vmatprep.subr.mxu0 %v3104_v1  ;;  %1874 = vmatprep.subr.mxu1 %v3106_v0 }
 0x5a2   :  { %1804 = vmatpush1.msra.mxu0 %v3110_v57  ;;  %1875 = vmatpush1.msra.mxu1 %v3112_v7 }
 0x5a3   :  { %1805 = vmatprep.subr.mxu0 %v3116_v8  ;;  %1876 = vmatprep.subr.mxu1 %v3118_v11 }
 0x5a4   :  { %1806 = vmatpush1.msra.mxu0 %v3122_v60  ;;  %1877 = vmatpush1.msra.mxu1 %v3124_v12 }
 0x5a5   :  { %1807 = vmatprep.subr.mxu0 %v3128_v13  ;;  %1878 = vmatprep.subr.mxu1 %v3130_v14 }
 0x5a6   :  { %1808 = vmatpush1.msra.mxu0 %v3134_v15  ;;  %1879 = vmatpush1.msra.mxu1 %v3136_v16 }
 0x5a7   :  { %1809 = vmatprep.subr.mxu0 %v3140_v17  ;;  %1880 = vmatprep.subr.mxu1 %v3142_v18 }
 0x5a8   :  { %1810 = vmatpush1.msra.mxu0 %v3146_v19  ;;  %1881 = vmatpush1.msra.mxu1 %v3148_v20 }
 0x5a9   :  { %1811 = vmatprep.subr.mxu0 %v3152_v21  ;;  %1882 = vmatprep.subr.mxu1 %v3154_v22 }
 0x5aa   :  { %1812 = vmatpush1.msra.mxu0 %v3158_v23  ;;  %1883 = vmatpush1.msra.mxu1 %v3160_v24 }
 0x5ab   :  { %1813 = vmatprep.subr.mxu0 %v3164_v25  ;;  %1884 = vmatprep.subr.mxu1 %v3166_v26 }
 0x5ac   :  { %1814 = vmatpush1.msra.mxu0 %v3170_v27  ;;  %1885 = vmatpush1.msra.mxu1 %v3172_v28 }
 0x5ad   :  { %1815 = vmatprep.subr.mxu0 %v3176_v29  ;;  %1886 = vmatprep.subr.mxu1 %v3178_v30 }
 0x5ae   :  { %1816 = vmatpush1.msra.mxu0 %v3182_v32  ;;  %1887 = vmatpush1.msra.mxu1 %v3184_v33 }
 0x5af   :  { %1817 = vmatprep.subr.mxu0 %v3188_v35  ;;  %1888 = vmatprep.subr.mxu1 %v3190_v36 }
 0x5b0   :  { %1818 = vmatpush1.msra.mxu0 %v3194_v37  ;;  %1889 = vmatpush1.msra.mxu1 %v3196_v39 }
 0x5b1   :  { %1819 = vmatprep.subr.mxu0 %v3200_v40  ;;  %1890 = vmatprep.subr.mxu1 %v3202_v41 }
 0x5b2   :  { %1820 = vmatpush1.msra.mxu0 %v3206_v43  ;;  %1891 = vmatpush1.msra.mxu1 %v3208_v44 }
 0x5b3   :  { %1821 = vmatprep.subr.mxu0 %v3212_v45  ;;  %1892 = vmatprep.subr.mxu1 %v3214_v46 }
 0x5b4   :  { %1822 = vmatpush1.msra.mxu0 %v3218_v47  ;;  %1893 = vmatpush1.msra.mxu1 %v3220_v48 }
 0x5b5   :  { %1823 = vmatprep.subr.mxu0 %v3865_v42  ;;  %1894 = vmatprep.subr.mxu1 %v3866_v34 }
 0x5b6   :  { %1824 = vmatpush1.msra.mxu0 %v3867_v38  ;;  %1895 = vmatpush1.msra.mxu1 %v3868_v56 }
 0x5b7   :  { %1825 = vmatprep.subr.mxu0 %v3869_v5  ;;  %1896 = vmatprep.subr.mxu1 %v3870_v2 }
 0x5b8   :  { %1826 = vmatpush1.msra.mxu0 %v3871_v63  ;;  %1897 = vmatpush1.msra.mxu1 %v3872_v10 }
 0x5b9   :  { %1827 = vmatprep.subr.mxu0 %v3873_v4  ;;  %1898 = vmatprep.subr.mxu1 %v3874_v61  ;;  %v3885_v61 = vld [vmem:[#allocation28_spill] sm:$0xff] }
 0x5ba   :  { %1828 = vmatpush1.msra.mxu0 %v3875_v54  ;;  %1899 = vmatpush1.msra.mxu1 %v3876_v58  ;;  %v3886_v58 = vld [vmem:[#allocation7_spill] sm:$0xff] }
 0x5bb   :  { %1829 = vmatprep.subr.mxu0 %v3877_v6  ;;  %1900 = vmatprep.subr.mxu1 %v3878_v53  ;;  %v3887_v6 = vld [vmem:[#allocation8_spill] sm:$0xff] }
 0x5bc   :  { %1830 = vmatpush1.msra.mxu0 %v3879_v55  ;;  %1901 = vmatpush1.msra.mxu1 %v3880_v49  ;;  %v1534_v53 = vld [vmem:[#allocation2 + $0x6] ss:$8 sm:$0xf] }
 0x5bd   :  { %1831 = vmatprep.subr.mxu0 %v3881_v50  ;;  %1902 = vmatprep.subr.mxu1 %v3882_v51  ;;  %v3888_v55 = vld [vmem:[#allocation29_spill] sm:$0xff]  ;;  %v3889_v50 = vld [vmem:[#allocation30_spill] sm:$0xff] }
 0x5be   :  { %1832 = vmatpush1.msra.mxu0 %v3883_v52  ;;  %1865 = vmatprep.mubr.f32.mxu0 %v3884_v62  ;;  %v1539_v54 = vrot.slane %v1534_v53, %v3888_v55  ;;  %v1543_v10 = vrot.slane %v1534_v53, %v3889_v50  ;;  %v3890_v52 = vld [vmem:[#allocation31_spill] sm:$0xff] }
 0x5bf   :  { %1903 = vmatpush1.msra.mxu1 %v3885_v61  ;;  %1936 = vmatprep.mubr.f32.mxu1 %v3884_v62  ;;  %v1547_v2 = vrot.slane %v1534_v53, %v3890_v52 }
 0x5c0   :  { %2045 = vmatprep.subr.mxu0 %v3886_v58  ;;  %2116 = vmatprep.subr.mxu1 %v3887_v6  ;;  %v1551_v58 = vrot.slane %v1534_v53, %v2862_v9 }
 0x65f   :  { %v1622_v49 = vpop.f32.mrf.mxu0  ;;  %v1693_v51 = vpop.f32.mrf.mxu1 }
 0x660   :  { %v1623_v4 = vadd.f32 %v1622_v49, %v1539_v54  ;;  %v1694_v61 = vadd.f32 %v1693_v51, %v1547_v2 }
 0x661   :  { %v1624_v63 = vpop.f32.mrf.mxu0  ;;  %v1695_v62 = vpop.f32.mrf.mxu1 }
 0x662   :  { %2521 = vtanh.f32 %v1623_v4  ;;  %v1625_v5 = vadd.f32 %v1624_v63, %v1543_v10  ;;  %v1696_v6 = vadd.f32 %v1695_v62, %v1551_v58  ;;  %v2220_v58 = vld [vmem:[%s3609_s4 + $0x78] sm:$0xff] }
 0x664   :  { %2523 = vtanh.f32 %v1625_v5 }
 0x665   :  { %2525 = vtanh.f32 %v1694_v61 }
 0x666   :  { %2527 = vtanh.f32 %v1696_v6  ;;  %v2218_v6 = vld [vmem:[%s3609_s4 + $0x68] sm:$0xff] }
 0x66f   :  { %v2522_v56 = vpop.eup %2521 }
 0x670   :  { %v1702_v38 = vmul.f32 0.5, %v2522_v56 }
 0x671   :  { %v2524_v55 = vpop.eup %2523 }
 0x672   :  { %v1703_v34 = vadd.f32 0.5, %v1702_v38  ;;  %v1704_v54 = vmul.f32 0.5, %v2524_v55  ;;  %v2526_v50 = vpop.eup %2525 }
 0x673   :  { %v2528_v5 = vpop.eup %2527 }
 0x674   :  { %v1705_v49 = vadd.f32 0.5, %v1704_v54  ;;  %v1709_v42 = vmul.f32 %v2526_v50, %v1703_v34  ;;  %v1706_v2 = vmul.f32 0.5, %v2528_v5  ;;  %v2217_v54 = vld [vmem:[%s3609_s4 + $0x60] sm:$0xff]  ;;  %v2214_v5 = vld [vmem:[%s3609_s4 + $0x48] sm:$0xff] }
 0x676   :  { %v1708_v4 = vmul.f32 %v1705_v49, %v3365_v31  ;;  %v1707_v63 = vadd.f32 0.5, %v1706_v2  ;;  %v2216_v49 = vld [vmem:[%s3609_s4 + $0x58] sm:$0xff]  ;;  %v2213_v2 = vld [vmem:[%s3609_s4 + $0x40] sm:$0xff] }
 0x678   :  { %v3439_v52 = vadd.f32 %v1709_v42, %v1708_v4  ;;  %v2215_v4 = vld [vmem:[%s3609_s4 + $0x50] sm:$0xff] }
 0x67a   :  { %2529 = vtanh.f32 %v3439_v52 }
 0x687   :  { %v2530_v10 = vpop.eup %2529 }
 0x688   :  { %v1712_v61 = vmul.f32 %v2530_v10, %v1707_v63  ;;  %v2212_v63 = vld [vmem:[%s3609_s4 + $0x38] sm:$0xff]  ;;  %v2211_v10 = vld [vmem:[%s3609_s4 + $0x30] sm:$0xff] }
 0x68a   :  { %1713 = vst [vmem:[#allocation3 + $0x5] sm:$0x1] %v1712_v61  ;;  %1866 = vmatmul.mubr.f32.vlgmr.msra.gmra.mxu0 %v1712_v61  ;;  %1937 = vmatmul.mubr.f32.vlgmr.msra.gmra.mxu1 %v1712_v61  ;;  %v2210_v61 = vld [vmem:[%s3609_s4 + $0x28] sm:$0xff] }
 0x68b   :  { %2046 = vmatpush1.msra.mxu0 %v3098_v3  ;;  %2117 = vmatpush1.msra.mxu1 %v3100_v59  ;;  %v3891_v3 = vld [vmem:[#allocation9_spill] sm:$0xff]  ;;  %v3892_v59 = vld [vmem:[#allocation10_spill] sm:$0xff] }
 0x68c   :  { %2047 = vmatprep.subr.mxu0 %v3104_v1  ;;  %2118 = vmatprep.subr.mxu1 %v3106_v0  ;;  %v3893_v1 = vld [vmem:[#allocation11_spill] sm:$0xff]  ;;  %v3894_v0 = vld [vmem:[#allocation12_spill] sm:$0xff] }
 0x68d   :  { %2048 = vmatpush1.msra.mxu0 %v3110_v57  ;;  %2119 = vmatpush1.msra.mxu1 %v3112_v7  ;;  %v3895_v57 = vld [vmem:[#allocation13_spill] sm:$0xff]  ;;  %v3896_v7 = vld [vmem:[#allocation14_spill] sm:$0xff] }
 0x68e   :  { %2049 = vmatprep.subr.mxu0 %v3116_v8  ;;  %2120 = vmatprep.subr.mxu1 %v3118_v11  ;;  %v3897_v8 = vld [vmem:[#allocation15_spill] sm:$0xff]  ;;  %v3898_v11 = vld [vmem:[#allocation16_spill] sm:$0xff] }
 0x68f   :  { %2050 = vmatpush1.msra.mxu0 %v3122_v60  ;;  %2121 = vmatpush1.msra.mxu1 %v3124_v12  ;;  %v3899_v60 = vld [vmem:[#allocation17_spill] sm:$0xff]  ;;  %v3900_v12 = vld [vmem:[#allocation18_spill] sm:$0xff] }
 0x690   :  { %2051 = vmatprep.subr.mxu0 %v3128_v13  ;;  %2122 = vmatprep.subr.mxu1 %v3130_v14  ;;  %v3901_v13 = vld [vmem:[#allocation19_spill] sm:$0xff]  ;;  %v3902_v14 = vld [vmem:[#allocation20_spill] sm:$0xff] }
 0x691   :  { %2052 = vmatpush1.msra.mxu0 %v3134_v15  ;;  %2123 = vmatpush1.msra.mxu1 %v3136_v16  ;;  %v3903_v15 = vld [vmem:[#allocation21_spill] sm:$0xff]  ;;  %v3904_v16 = vld [vmem:[#allocation22_spill] sm:$0xff] }
 0x692   :  { %2053 = vmatprep.subr.mxu0 %v3140_v17  ;;  %2124 = vmatprep.subr.mxu1 %v3142_v18  ;;  %v3905_v17 = vld [vmem:[#allocation23_spill] sm:$0xff]  ;;  %v3906_v18 = vld [vmem:[#allocation24_spill] sm:$0xff] }
 0x693   :  { %2054 = vmatpush1.msra.mxu0 %v3146_v19  ;;  %2125 = vmatpush1.msra.mxu1 %v3148_v20  ;;  %v3907_v19 = vld [vmem:[#allocation25_spill] sm:$0xff]  ;;  %v3908_v20 = vld [vmem:[#allocation26_spill] sm:$0xff] }
 0x694   :  { %2055 = vmatprep.subr.mxu0 %v3152_v21  ;;  %2126 = vmatprep.subr.mxu1 %v3154_v22  ;;  %v3909_v21 = vld [vmem:[#allocation27_spill] sm:$0xff]  ;;  %v3910_v22 = vmov 0.0  }
 0x695   :  { %2056 = vmatpush1.msra.mxu0 %v3158_v23  ;;  %2127 = vmatpush1.msra.mxu1 %v3160_v24  ;;  %v3911_v23 = vld [vmem:[#allocation28_spill] sm:$0xff] }
 0x696   :  { %2057 = vmatprep.subr.mxu0 %v3164_v25  ;;  %2128 = vmatprep.subr.mxu1 %v3166_v26  ;;  %v1779_v24 = vld [vmem:[#allocation2 + $0x7] ss:$8 sm:$0xf] }
 0x697   :  { %2058 = vmatpush1.msra.mxu0 %v3170_v27  ;;  %2129 = vmatpush1.msra.mxu1 %v3172_v28  ;;  %v3912_v25 = vld [vmem:[#allocation29_spill] sm:$0xff] }
 0x698   :  { %2059 = vmatprep.subr.mxu0 %v3176_v29  ;;  %2130 = vmatprep.subr.mxu1 %v3178_v30  ;;  %v1784_v26 = vrot.slane %v1779_v24, %v3912_v25  ;;  %v3913_v29 = vld [vmem:[#allocation30_spill] sm:$0xff] }
 0x699   :  { %2060 = vmatpush1.msra.mxu0 %v3182_v32  ;;  %2131 = vmatpush1.msra.mxu1 %v3184_v33  ;;  %v1788_v30 = vrot.slane %v1779_v24, %v3913_v29 }
 0x69a   :  { %2061 = vmatprep.subr.mxu0 %v3188_v35  ;;  %2132 = vmatprep.subr.mxu1 %v3190_v36  ;;  %v3914_v35 = vld [vmem:[#allocation31_spill] sm:$0xff] }
 0x69b   :  { %2062 = vmatpush1.msra.mxu0 %v3194_v37  ;;  %2133 = vmatpush1.msra.mxu1 %v3196_v39  ;;  %v1792_v36 = vrot.slane %v1779_v24, %v3914_v35 }
 0x69c   :  { %2063 = vmatprep.subr.mxu0 %v3200_v40  ;;  %2134 = vmatprep.subr.mxu1 %v3202_v41  ;;  %v1796_v41 = vrot.slane %v1779_v24, %v2862_v9 }
 0x69d   :  { %2064 = vmatpush1.msra.mxu0 %v3206_v43  ;;  %2135 = vmatpush1.msra.mxu1 %v3208_v44 }
 0x69e   :  { %2065 = vmatprep.subr.mxu0 %v3212_v45  ;;  %2136 = vmatprep.subr.mxu1 %v3214_v46 }
 0x69f   :  { %2066 = vmatpush1.msra.mxu0 %v3218_v47  ;;  %2137 = vmatpush1.msra.mxu1 %v3220_v48 }
 0x6a0   :  { %2067 = vmatprep.subr.mxu0 %v3891_v3  ;;  %2138 = vmatprep.subr.mxu1 %v3892_v59  ;;  %v2209_v3 = vld [vmem:[%s3609_s4 + $0x20] sm:$0xff]  ;;  %v2208_v59 = vld [vmem:[%s3609_s4 + $0x18] sm:$0xff] }
 0x6a1   :  { %2068 = vmatpush1.msra.mxu0 %v3893_v1  ;;  %2139 = vmatpush1.msra.mxu1 %v3894_v0  ;;  %v2207_v1 = vld [vmem:[%s3609_s4 + $0x10] sm:$0xff]  ;;  %v2206_v0 = vld [vmem:[%s3609_s4 + $0x8] sm:$0xff] }
 0x6a2   :  { %2069 = vmatprep.subr.mxu0 %v3895_v57  ;;  %2140 = vmatprep.subr.mxu1 %v3896_v7  ;;  %v2205_v57 = vld [vmem:[%s3609_s4] sm:$0xff] }
 0x6a3   :  { %2070 = vmatpush1.msra.mxu0 %v3897_v8  ;;  %2141 = vmatpush1.msra.mxu1 %v3898_v11  ;;  %v2023_v7 = vld [vmem:[%s3607_s2] sm:$0xf] }
 0x6a4   :  { %2071 = vmatprep.subr.mxu0 %v3899_v60  ;;  %2142 = vmatprep.subr.mxu1 %v3900_v12  ;;  %v2028_v8 = vrot.slane %v2023_v7, %v3912_v25  ;;  %v2032_v11 = vrot.slane %v2023_v7, %v3913_v29 }
 0x6a5   :  { %2072 = vmatpush1.msra.mxu0 %v3901_v13  ;;  %2143 = vmatpush1.msra.mxu1 %v3902_v14  ;;  %v2036_v13 = vrot.slane %v2023_v7, %v3914_v35 }
 0x6a6   :  { %2073 = vmatprep.subr.mxu0 %v3903_v15  ;;  %2144 = vmatprep.subr.mxu1 %v3904_v16 }
 0x6a7   :  { %2074 = vmatpush1.msra.mxu0 %v3905_v17  ;;  %2145 = vmatpush1.msra.mxu1 %v3906_v18  ;;  %v2040_v18 = vrot.slane %v2023_v7, %v2862_v9 }
 0x6a8   :  { %2075 = vmatprep.subr.mxu0 %v3907_v19  ;;  %2146 = vmatprep.subr.mxu1 %v3908_v20 }
 0x6a9   :  { %2076 = vmatpush1.msra.mxu0 %v3909_v21  ;;  %2109 = vmatprep.mubr.f32.mxu0 %v3910_v22 }
 0x6aa   :  { %2147 = vmatpush1.msra.mxu1 %v3911_v23  ;;  %2180 = vmatprep.mubr.f32.mxu1 %v3910_v22 }
 0x6ab   :  { %2420 = vmatprep.subr.mxu0 %v3910_v22  ;;  %2455 = vmatprep.subr.mxu1 %v3910_v22 }
 0x74a   :  { %v1867_v27 = vpop.f32.mrf.mxu0  ;;  %v1938_v32 = vpop.f32.mrf.mxu1 }
 0x74b   :  { %v1868_v28 = vadd.f32 %v1867_v27, %v1784_v26  ;;  %v1939_v39 = vadd.f32 %v1938_v32, %v1792_v36 }
 0x74c   :  { %v1869_v33 = vpop.f32.mrf.mxu0  ;;  %v1940_v40 = vpop.f32.mrf.mxu1 }
 0x74d   :  { %2531 = vtanh.f32 %v1868_v28  ;;  %v1870_v37 = vadd.f32 %v1869_v33, %v1788_v30  ;;  %v1941_v43 = vadd.f32 %v1940_v40, %v1796_v41  ;;  %v2300_v41 = vld [vmem:[%s3611_s6 + $0x8] sm:$0xf] }
 0x74f   :  { %2533 = vtanh.f32 %v1870_v37 }
 0x750   :  { %2535 = vtanh.f32 %v1939_v39 }
 0x751   :  { %2537 = vtanh.f32 %v1941_v43  ;;  %v2299_v43 = vld [vmem:[%s3611_s6] sm:$0xff] }
 0x75a   :  { %v2532_v44 = vpop.eup %2531 }
 0x75b   :  { %v1947_v45 = vmul.f32 0.5, %v2532_v44  ;;  %v2396_v44 = vld [vmem:[%s3610_s5] ss:$0 sm:$0xff] }
 0x75c   :  { %v2534_v46 = vpop.eup %2533 }
 0x75d   :  { %v1948_v47 = vadd.f32 0.5, %v1947_v45  ;;  %v1949_v48 = vmul.f32 0.5, %v2534_v46  ;;  %v2536_v42 = vpop.eup %2535 }
 0x75e   :  { %v2538_v53 = vpop.eup %2537 }
 0x75f   :  { %v1950_v31 = vadd.f32 0.5, %v1949_v48  ;;  %v1954_v38 = vmul.f32 %v2536_v42, %v1948_v47  ;;  %v1951_v55 = vmul.f32 0.5, %v2538_v53 }
 0x761   :  { %v1953_v34 = vmul.f32 %v1950_v31, %v3439_v52  ;;  %v1952_v50 = vadd.f32 0.5, %v1951_v55  ;;  %v2219_v52 = vld [vmem:[%s3609_s4 + $0x70] sm:$0xff]  ;;  %v2397_v31 = vld [vmem:[%s3612_s7] ss:$0 sm:$0xff] }
 0x763   :  { %v3513_v56 = vadd.f32 %v1954_v38, %v1953_v34 }
 0x765   :  { %2539 = vtanh.f32 %v3513_v56 }
 0x772   :  { %v2540_v51 = vpop.eup %2539 }
 0x773   :  { %v1957_v62 = vmul.f32 %v2540_v51, %v1952_v50 }
 0x775   :  { %1958 = vst [vmem:[#allocation3 + $0x6] sm:$0x1] %v1957_v62  ;;  %2110 = vmatmul.mubr.f32.vlgmr.msra.gmra.mxu0 %v1957_v62  ;;  %2181 = vmatmul.mubr.f32.vlgmr.msra.gmra.mxu1 %v1957_v62 }
 0x776   :  { %2421 = vmatpush3.msra.mxu0 %v2220_v58  ;;  %2452 = vmatprep.mubr.msk.f32.mxu0 %vm2577_vm2, %v3910_v22 }
 0x777   :  { %2422 = vmatprep.subr.mxu0 %v3910_v22  ;;  %2459 = vmatprep.mubr.msk.f32.mxu1 %vm2577_vm2, %v3910_v22 }
 0x778   :  { %2423 = vmatpush3.msra.mxu0 %v2219_v52  ;;  %2456 = vmatpush3.msk.msra.mxu1 %vm2312_vm3, %v2300_v41 }
 0x779   :  { %2424 = vmatprep.subr.mxu0 %v3910_v22  ;;  %2457 = vmatprep.subr.mxu1 %v3910_v22 }
 0x77a   :  { %2425 = vmatpush3.msra.mxu0 %v2218_v6  ;;  %2458 = vmatpush3.msra.mxu1 %v2299_v43 }
 0x77b   :  { %2426 = vmatprep.subr.mxu0 %v3910_v22 }
 0x77c   :  { %2427 = vmatpush3.msra.mxu0 %v2217_v54 }
 0x77d   :  { %2428 = vmatprep.subr.mxu0 %v3910_v22 }
 0x77e   :  { %2429 = vmatpush3.msra.mxu0 %v2216_v49 }
 0x77f   :  { %2430 = vmatprep.subr.mxu0 %v3910_v22 }
 0x780   :  { %2431 = vmatpush3.msra.mxu0 %v2215_v4 }
 0x781   :  { %2432 = vmatprep.subr.mxu0 %v3910_v22 }
 0x782   :  { %2433 = vmatpush3.msra.mxu0 %v2214_v5 }
 0x783   :  { %2434 = vmatprep.subr.mxu0 %v3910_v22 }
 0x784   :  { %2435 = vmatpush3.msra.mxu0 %v2213_v2 }
 0x785   :  { %2436 = vmatprep.subr.mxu0 %v3910_v22 }
 0x786   :  { %2437 = vmatpush3.msra.mxu0 %v2212_v63 }
 0x787   :  { %2438 = vmatprep.subr.mxu0 %v3910_v22 }
 0x788   :  { %2439 = vmatpush3.msra.mxu0 %v2211_v10 }
 0x789   :  { %2440 = vmatprep.subr.mxu0 %v3910_v22 }
 0x78a   :  { %2441 = vmatpush3.msra.mxu0 %v2210_v61 }
 0x78b   :  { %2442 = vmatprep.subr.mxu0 %v3910_v22 }
 0x78c   :  { %2443 = vmatpush3.msra.mxu0 %v2209_v3 }
 0x78d   :  { %2444 = vmatprep.subr.mxu0 %v3910_v22 }
 0x78e   :  { %2445 = vmatpush3.msra.mxu0 %v2208_v59 }
 0x78f   :  { %2446 = vmatprep.subr.mxu0 %v3910_v22 }
 0x790   :  { %2447 = vmatpush3.msra.mxu0 %v2207_v1 }
 0x791   :  { %2448 = vmatprep.subr.mxu0 %v3910_v22 }
 0x792   :  { %2449 = vmatpush3.msra.mxu0 %v2206_v0 }
 0x793   :  { %2450 = vmatprep.subr.mxu0 %v3910_v22 }
 0x794   :  { %2451 = vmatpush3.msra.mxu0 %v2205_v57 }
 0x835   :  { %v2111_v60 = vpop.f32.mrf.mxu0  ;;  %v2182_v14 = vpop.f32.mrf.mxu1 }
 0x836   :  { %v2112_v12 = vadd.f32 %v2111_v60, %v2028_v8  ;;  %v2183_v17 = vadd.f32 %v2182_v14, %v2036_v13 }
 0x837   :  { %v2113_v15 = vpop.f32.mrf.mxu0  ;;  %v2184_v19 = vpop.f32.mrf.mxu1 }
 0x838   :  { %2541 = vtanh.f32 %v2112_v12  ;;  %v2114_v16 = vadd.f32 %v2113_v15, %v2032_v11  ;;  %v2185_v20 = vadd.f32 %v2184_v19, %v2040_v18 }
 0x83a   :  { %2543 = vtanh.f32 %v2114_v16 }
 0x83b   :  { %2545 = vtanh.f32 %v2183_v17 }
 0x83c   :  { %2547 = vtanh.f32 %v2185_v20 }
 0x845   :  { %v2542_v21 = vpop.eup %2541 }
 0x846   :  { %v2191_v23 = vmul.f32 0.5, %v2542_v21 }
 0x847   :  { %v2544_v24 = vpop.eup %2543 }
 0x848   :  { %v2192_v25 = vadd.f32 0.5, %v2191_v23  ;;  %v2193_v26 = vmul.f32 0.5, %v2544_v24  ;;  %v2546_v28 = vpop.eup %2545 }
 0x849   :  { %v2548_v33 = vpop.eup %2547 }
 0x84a   :  { %v2194_v27 = vadd.f32 0.5, %v2193_v26  ;;  %v2198_v30 = vmul.f32 %v2546_v28, %v2192_v25  ;;  %v2195_v35 = vmul.f32 0.5, %v2548_v33 }
 0x84c   :  { %v2197_v29 = vmul.f32 %v2194_v27, %v3513_v56  ;;  %v2196_v36 = vadd.f32 0.5, %v2195_v35 }
 0x84e   :  { %v2199_v32 = vadd.f32 %v2198_v30, %v2197_v29 }
 0x850   :  { %2549 = vtanh.f32 %v2199_v32 }
 0x85d   :  { %v2550_v37 = vpop.eup %2549 }
 0x85e   :  { %v2201_v9 = vmul.f32 %v2550_v37, %v2196_v36 }
 0x860   :  { %2202 = vst [vmem:[#allocation3 + $0x7] sm:$0x1] %v2201_v9 }
 0x867   :  { %v2203_v39 = vld [vmem:[#allocation3] sm:$0xff] }
 0x868   :  { %v2204_v40 = vmax.f32 %v2203_v39, 0.0 }
 0x86a   :  { %2453 = vmatmul.mubr.f32.vlgmr.msra.gmra.mxu0 %v2204_v40 }
 0x92a   :  { %v2294_v45 = vpop.f32.mrf.mxu0 }
 0x92b   :  { %v2295_v46 = vadd.f32 %v2396_v44, %v2294_v45 }
 0x92c   :  { %v2454_v47 = vpop.f32.mrf.mxu0 }
 0x92d   :  { %v2298_v48 = vmax.f32 %v2295_v46, 0.0 }
 0x92f   :  { %2460 = vmatmul.mubr.msk.f32.vlgmr.msra.gmra.mxu1 %vm2308_vm4, %v2298_v48 }
 0x9ef   :  { %v2382_v42 = vpop.f32.mrf.mxu1 }
 0x9f0   :  { %v2383_v34 = vadd.f32 %v2397_v31, %v2382_v42 }
 0x9f1   :  { %v2461_v38 = vpop.f32.mrf.mxu1 }
 0x9f2   :  { %2387 = vst.msk [vmem:[%s3613_s8] sm:$0xff] %vm2386_vm5, %v2383_v34 }
 0x9f3   :  { %2392 = vsyncpa [#allocation5], 1 }

</bundles_post_ra>
